<compile_context>
chip_gen: v7x
topology: tpu7x:2x2x1
jax: 0.10.0
libtpu: 0.0.40
codegen_flags: <defaults>
</compile_context>

<pallas_src>
import functools
import math

import jax
import jax.numpy as jnp
import numpy as np
from jax import lax
from jax.experimental import pallas as pl
from jax.experimental.pallas import tpu as pltpu


_PAD = 8  # carried left-context rows for the causal conv (>= d_conv - 1, mult of 8)


def _row_to_col(row, eye_mask):
  # (1, n) -> (n, 1) without a vector transpose: mask a sublane-broadcast of
  # the row with an identity pattern and lane-reduce.
  n = eye_mask.shape[0]
  m = jnp.where(eye_mask, jnp.broadcast_to(row, (n, n)), 0.0)
  return jnp.sum(m, axis=1, keepdims=True)


def _mamba_layer_kernel(
    # inputs
    x_ref, lnw_ref, lnb_ref, win_ref, convw_ref, convb_ref,
    wdbc_ref, bdbc_ref, at_ref, dskip_ref, wout_ref,
    # outputs
    out_ref,
    # scratch (h_ref / tail_ref are carried across the chunk axis)
    h_ref, tail_ref, xpad_ref, dt_ref, dtu_ref, b_ref, c_ref, y_ref,
    *, tL, d_inner, d_state, d_conv, pad, eps, unroll):
  f32 = jnp.float32
  bf16 = jnp.bfloat16
  chunk_idx = pl.program_id(1)

  # Reset carried SSM state / conv left-context at the start of each batch row.
  @pl.when(chunk_idx == 0)
  def _():
    h_ref[...] = jnp.zeros_like(h_ref)
    tail_ref[...] = jnp.zeros_like(tail_ref)

  x = x_ref[0].astype(f32)                                  # (tL, C)

  # ---- LayerNorm over the channel dim ----
  mu = jnp.mean(x, axis=-1, keepdims=True)
  xc = x - mu
  var = jnp.mean(xc * xc, axis=-1, keepdims=True)
  xn = xc * lax.rsqrt(var + eps) * lnw_ref[...] + lnb_ref[...]

  # ---- in_proj (no bias): (tL, C) @ (C, 2*d_inner), bf16 operands, f32 acc ----
  xz = jnp.dot(xn.astype(bf16), win_ref[...], preferred_element_type=f32)
  xs = xz[:, :d_inner]                                      # conv / SSM branch
  z = xz[:, d_inner:]                                       # gate branch

  # ---- causal depthwise conv1d; left context carried across chunks ----
  xpad_ref[0:pad, :] = tail_ref[...]
  xpad_ref[pad:, :] = xs
  if tL >= pad:
    tail_ref[...] = xs[tL - pad:, :]                        # context for next chunk
  conv = jnp.zeros((tL, d_inner), f32)
  for k in range(d_conv):
    off = pad - (d_conv - 1) + k
    conv = conv + xpad_ref[off:off + tL, :] * convw_ref[k:k + 1, :]
  conv = conv + convb_ref[...]
  u = conv * jax.nn.sigmoid(conv)                           # SiLU

  # ---- fused x_proj + dt_proj: ONE matmul producing [dt_pre | B | C] ----
  dbc = jnp.dot(u.astype(bf16), wdbc_ref[...], preferred_element_type=f32)
  dbc = dbc + bdbc_ref[...]
  dt = jax.nn.softplus(dbc[:, :d_inner])                    # (tL, d_inner)
  dt_ref[...] = dt
  dtu_ref[...] = dt * u                                     # hoisted out of the scan
  b_ref[...] = dbc[:, d_inner:d_inner + d_state]            # (tL, d_state)
  c_ref[...] = dbc[:, d_inner + d_state:]                   # (tL, d_state)

  # ---- selective scan:
  #      h[n,j] <- exp(dt[t,j] * A[j,n]) * h[n,j] + B[t,n] * dt[t,j] * u[t,j]
  #      y[t,j]  = sum_n C[t,n] * h[n,j]
  # The carried dependency per step is a single fma on h; exp / B-column /
  # C@h are off that chain and overlap under the manual unroll.
  at = at_ref[...]                                          # (d_state, d_inner) == A^T
  ii = lax.broadcasted_iota(jnp.int32, (d_state, d_state), 0)
  jj = lax.broadcasted_iota(jnp.int32, (d_state, d_state), 1)
  eye_mask = ii == jj

  def body(i, h):
    t0 = pl.multiple_of(i * unroll, unroll)
    for s in range(unroll):                                 # static unroll
      t = t0 + s
      dt_t = dt_ref[pl.ds(t, 1), :]                         # (1, d_inner)
      dtu_t = dtu_ref[pl.ds(t, 1), :]                       # (1, d_inner)
      b_t = b_ref[pl.ds(t, 1), :]                           # (1, d_state)
      c_t = c_ref[pl.ds(t, 1), :]                           # (1, d_state)
      d_a = jnp.exp(dt_t * at)                              # (d_state, d_inner)
      d_bu = _row_to_col(b_t, eye_mask) * dtu_t             # (d_state, d_inner)
      h = d_a * h + d_bu
      y_ref[pl.ds(t, 1), :] = jnp.dot(c_t, h, preferred_element_type=f32)
    return h

  h_final = lax.fori_loop(0, tL // unroll, body, h_ref[...])
  h_ref[...] = h_final                                      # carry to next chunk

  # ---- D skip connection, SiLU(z) gate, out_proj ----
  y = y_ref[...] + u * dskip_ref[...]
  y = y * (z * jax.nn.sigmoid(z))
  out = jnp.dot(y.astype(bf16), wout_ref[...], preferred_element_type=f32)
  # TODO(synk): for dim < 128 this store is lane-masked; pad C to 128 lanes in
  # the wrapper (or pack batches per block) for a lane-dense epilogue.
  out_ref[0] = out.astype(out_ref.dtype)


def _pick_chunk(L, d_inner, d_state):
  """Largest chunk dividing L whose per-chunk f32 scratch stays small."""
  budget = 8 * 1024 * 1024

  def scratch_bytes(t):
    per_chunk = (t + _PAD) * d_inner + 3 * t * d_inner + 2 * t * d_state
    carried = d_state * d_inner + _PAD * d_inner
    return 4 * (per_chunk + carried)

  for cand in (1024, 512, 256, 128, 64, 32, 16, 8):
    if L % cand == 0 and scratch_bytes(cand) <= budget:
      return cand
  return L


def _vmem_limit_bytes():
  try:
    cap = int(pltpu.get_tpu_info().vmem_capacity_bytes)
    return int(min(0.7 * cap, 96 * 1024 * 1024))
  except Exception:
    return None


def mamba_layer_forward(x, params, *, chunk=None, unroll=8):
  """MambaLayer forward for channels-first input x of shape (B, C, *spatial)."""
  B, C = x.shape[0], x.shape[1]
  img_dims = tuple(x.shape[2:])
  L = int(np.prod(img_dims)) if img_dims else 1
  x_tok = jnp.transpose(jnp.reshape(x, (B, C, L)), (0, 2, 1))   # (B, L, C)

  d_inner = params['win'].shape[1] // 2
  d_state = params['at'].shape[0]
  d_conv = params['convw'].shape[0]
  pad = _PAD
  if d_conv - 1 > pad:
    raise ValueError(f"d_conv={d_conv} needs {d_conv - 1} rows of left context "
                     f"but the carried conv tail only holds {pad}")

  tL = _pick_chunk(L, d_inner, d_state) if chunk is None else int(chunk)
  if L % tL != 0:
    raise ValueError(f"chunk={tL} must divide L={L}")
  n_chunks = L // tL
  if n_chunks > 1 and tL < pad:
    raise ValueError(f"chunk={tL} must be >= {pad} when L is chunked")
  unroll_eff = max(u for u in (1, 2, 4, 8) if u <= max(1, unroll) and tL % u == 0)

  f32, bf16 = jnp.float32, jnp.bfloat16
  # Fuse the low-rank dt projection and concatenate with the B/C projection so
  # the kernel issues a single lane-dense matmul for [dt | B | C].
  wdt_full = params['wdtr'].astype(f32) @ params['wdt'].astype(f32)
  wdbc = jnp.concatenate([wdt_full, params['wbc'].astype(f32)], axis=1).astype(bf16)
  bdbc = jnp.concatenate(
      [params['bdt'].astype(f32), jnp.zeros((1, 2 * d_state), f32)], axis=1)

  weights = [
      params['lnw'].astype(f32), params['lnb'].astype(f32),
      params['win'].astype(bf16),
      params['convw'].astype(f32), params['convb'].astype(f32),
      wdbc, bdbc,
      params['at'].astype(f32), params['dskip'].astype(f32),
      params['wout'].astype(bf16),
  ]

  kernel = functools.partial(
      _mamba_layer_kernel, tL=tL, d_inner=d_inner, d_state=d_state,
      d_conv=d_conv, pad=pad, eps=1e-5, unroll=unroll_eff)

  def w_spec(w):
    return pl.BlockSpec(w.shape, lambda b, c, nd=w.ndim: (0,) * nd)

  grid_spec = pltpu.PrefetchScalarGridSpec(
      num_scalar_prefetch=0,
      grid=(B, n_chunks),
      in_specs=[pl.BlockSpec((1, tL, C), lambda b, c: (b, c, 0))] +
               [w_spec(w) for w in weights],
      out_specs=pl.BlockSpec((1, tL, C), lambda b, c: (b, c, 0)),
      scratch_shapes=[
          pltpu.VMEM((d_state, d_inner), f32),      # carried SSM state h
          pltpu.VMEM((pad, d_inner), f32),          # carried conv left-context
          pltpu.VMEM((pad + tL, d_inner), f32),     # zero/tail-padded conv input
          pltpu.VMEM((tL, d_inner), f32),           # dt (post softplus)
          pltpu.VMEM((tL, d_inner), f32),           # dt * u (hoisted)
          pltpu.VMEM((tL, d_state), f32),           # B (input-dependent)
          pltpu.VMEM((tL, d_state), f32),           # C (input-dependent)
          pltpu.VMEM((tL, d_inner), f32),           # scan outputs y
      ])

  cp = dict(dimension_semantics=("parallel", "arbitrary"))
  vlim = _vmem_limit_bytes()
  if vlim is not None:
    cp["vmem_limit_bytes"] = vlim

  y_tok = pl.pallas_call(
      kernel,
      out_shape=jax.ShapeDtypeStruct((B, L, C), x.dtype),
      grid_spec=grid_spec,
      compiler_params=pltpu.CompilerParams(**cp),
  )(x_tok, *weights)

  return jnp.reshape(jnp.transpose(y_tok, (0, 2, 1)), (B, C) + img_dims)


def init_params(key, dim, d_state=16, d_conv=4, expand=2):
  """Deterministic synthetic parameters matching MambaLayer/Mamba shapes.

  Weights are stored pre-transposed for the token-major kernel layout:
  win   = in_proj.weight.T            (dim, 2*d_inner)      [bias=False]
  convw = conv1d.weight[:, 0, :].T    (d_conv, d_inner)
  wdtr  = x_proj.weight[:dt_rank].T   (d_inner, dt_rank)
  wbc   = x_proj.weight[dt_rank:].T   (d_inner, 2*d_state)
  wdt   = dt_proj.weight.T            (dt_rank, d_inner)
  at    = (-exp(A_log)).T             (d_state, d_inner)
  wout  = out_proj.weight.T           (d_inner, dim)        [bias=False]
  """
  d_inner = expand * dim
  dt_rank = math.ceil(dim / 16)
  ks = jax.random.split(key, 12)
  f32 = jnp.float32

  def rnd(k, shape, scale):
    return (scale * jax.random.normal(k, shape)).astype(f32)

  a = jnp.tile(jnp.arange(1, d_state + 1, dtype=f32)[None, :], (d_inner, 1))
  a_log = jnp.log(a)                                        # Mamba S4D-real init
  at = (-jnp.exp(a_log)).T

  return dict(
      lnw=(1.0 + 0.1 * jax.random.normal(ks[0], (1, dim))).astype(f32),
      lnb=rnd(ks[1], (1, dim), 0.1),
      win=rnd(ks[2], (dim, 2 * d_inner), 1.0 / math.sqrt(dim)),
      convw=rnd(ks[3], (d_conv, d_inner), 0.3),
      convb=rnd(ks[4], (1, d_inner), 0.1),
      wdtr=rnd(ks[5], (d_inner, dt_rank), 1.0 / math.sqrt(d_inner)),
      wdt=rnd(ks[6], (dt_rank, d_inner), 0.5),
      bdt=(jnp.full((1, d_inner), -2.5) + rnd(ks[7], (1, d_inner), 0.2)).astype(f32),
      wbc=rnd(ks[8], (d_inner, 2 * d_state), 1.0 / math.sqrt(d_inner)),
      at=at.astype(f32),
      dskip=jnp.ones((1, d_inner), f32),
      wout=rnd(ks[9], (d_inner, dim), 1.0 / math.sqrt(d_inner)),
  )


def ref_forward(x, p):
  """Pure-JAX (f32) reference of MambaLayer.forward (LayerNorm + Mamba slow path)."""
  B, C = x.shape[:2]
  img_dims = x.shape[2:]
  L = int(np.prod(img_dims))
  d_inner = p['win'].shape[1] // 2
  d_state = p['at'].shape[0]
  d_conv = p['convw'].shape[0]

  xt = jnp.transpose(jnp.reshape(x, (B, C, L)), (0, 2, 1))  # (B, L, C)
  mu = xt.mean(-1, keepdims=True)
  var = ((xt - mu) ** 2).mean(-1, keepdims=True)
  xn = (xt - mu) / jnp.sqrt(var + 1e-5) * p['lnw'] + p['lnb']

  xz = xn @ p['win']
  xs, z = xz[..., :d_inner], xz[..., d_inner:]

  xs_pad = jnp.pad(xs, ((0, 0), (d_conv - 1, 0), (0, 0)))
  conv = sum(xs_pad[:, k:k + L, :] * p['convw'][k] for k in range(d_conv)) + p['convb']
  u = conv * jax.nn.sigmoid(conv)

  dt = jax.nn.softplus((u @ p['wdtr']) @ p['wdt'] + p['bdt'])  # (B, L, d_inner)
  bc = u @ p['wbc']
  Bs, Cs = bc[..., :d_state], bc[..., d_state:]
  A = p['at'].T                                                # (d_inner, d_state)

  def step(h, inp):
    dt_t, u_t, b_t, c_t = inp
    dA = jnp.exp(dt_t[..., None] * A)
    h = dA * h + (dt_t * u_t)[..., None] * b_t[:, None, :]
    y = jnp.einsum('bdn,bn->bd', h, c_t)
    return h, y

  h0 = jnp.zeros((B, d_inner, d_state), jnp.float32)
  _, ys = jax.lax.scan(step, h0,
                       (jnp.swapaxes(dt, 0, 1), jnp.swapaxes(u, 0, 1),
                        jnp.swapaxes(Bs, 0, 1), jnp.swapaxes(Cs, 0, 1)))
  y = jnp.swapaxes(ys, 0, 1)
  y = y + u * p['dskip']
  y = y * (z * jax.nn.sigmoid(z))
  out = y @ p['wout']
  return jnp.reshape(jnp.transpose(out, (0, 2, 1)), (B, C) + tuple(img_dims))


if __name__ == "__main__":
  dim = 32               # channels (== LayerNorm / Mamba d_model)
  B, H, W = 2, 16, 16    # 2D spatial example -> L = 256 tokens
  key = jax.random.PRNGKey(0)
  kx, kp = jax.random.split(key)

  x = jax.random.normal(kx, (B, dim, H, W), jnp.float32)
  params = init_params(kp, dim, d_state=16, d_conv=4, expand=2)

  # chunk=64 -> 4 sequence chunks per batch row, exercising the carried SSM
  # state and conv left-context across the sequential chunk axis.
  out = mamba_layer_forward(x, params, chunk=64)
  out = jax.block_until_ready(out)

  ref = ref_forward(x, params)
  assert out.shape == x.shape, (out.shape, x.shape)
  assert np.isfinite(np.asarray(out)).all()
  err = float(jnp.max(jnp.abs(out - ref)))
  scale = float(jnp.max(jnp.abs(ref)))
  assert err <= 5e-2 + 2e-2 * scale, f"max abs err {err} (ref max {scale})"
  print("KERNEL_OK")
</pallas_src>

<mosaic_0001>
module attributes {stable_mosaic.version = 11 : i64} {
  func.func @_mamba_layer_kernel(%arg0: i32, %arg1: i32, %arg2: memref<1x64x32xf32, #tpu.memory_space<vmem>>, %arg3: memref<1x32xf32, #tpu.memory_space<vmem>>, %arg4: memref<1x32xf32, #tpu.memory_space<vmem>>, %arg5: memref<32x128xbf16, #tpu.memory_space<vmem>>, %arg6: memref<4x64xf32, #tpu.memory_space<vmem>>, %arg7: memref<1x64xf32, #tpu.memory_space<vmem>>, %arg8: memref<64x96xbf16, #tpu.memory_space<vmem>>, %arg9: memref<1x96xf32, #tpu.memory_space<vmem>>, %arg10: memref<16x64xf32, #tpu.memory_space<vmem>>, %arg11: memref<1x64xf32, #tpu.memory_space<vmem>>, %arg12: memref<64x32xbf16, #tpu.memory_space<vmem>>, %arg13: memref<1x64x32xf32, #tpu.memory_space<vmem>>, %arg14: memref<16x64xf32, #tpu.memory_space<vmem>>, %arg15: memref<8x64xf32, #tpu.memory_space<vmem>>, %arg16: memref<72x64xf32, #tpu.memory_space<vmem>>, %arg17: memref<64x64xf32, #tpu.memory_space<vmem>>, %arg18: memref<64x64xf32, #tpu.memory_space<vmem>>, %arg19: memref<64x16xf32, #tpu.memory_space<vmem>>, %arg20: memref<64x16xf32, #tpu.memory_space<vmem>>, %arg21: memref<64x64xf32, #tpu.memory_space<vmem>>) attributes {dimension_semantics = [#tpu.dimension_semantics<parallel>, #tpu.dimension_semantics<arbitrary>], iteration_bounds = array<i64: 2, 4>, scalar_prefetch = 0 : i64, scratch_operands = 8 : i64, tpu.core_type = #tpu.core_type<tc>, window_params = [{transform_indices = @transform_0, window_bounds = array<i64: 1, 64, 32>}, {pipeline_mode = #tpu.pipeline_mode<synchronous>, transform_indices = @transform_1, window_bounds = array<i64: 1, 32>}, {pipeline_mode = #tpu.pipeline_mode<synchronous>, transform_indices = @transform_2, window_bounds = array<i64: 1, 32>}, {pipeline_mode = #tpu.pipeline_mode<synchronous>, transform_indices = @transform_3, window_bounds = array<i64: 32, 128>}, {pipeline_mode = #tpu.pipeline_mode<synchronous>, transform_indices = @transform_4, window_bounds = array<i64: 4, 64>}, {pipeline_mode = #tpu.pipeline_mode<synchronous>, transform_indices = @transform_5, window_bounds = array<i64: 1, 64>}, {pipeline_mode = #tpu.pipeline_mode<synchronous>, transform_indices = @transform_6, window_bounds = array<i64: 64, 96>}, {pipeline_mode = #tpu.pipeline_mode<synchronous>, transform_indices = @transform_7, window_bounds = array<i64: 1, 96>}, {pipeline_mode = #tpu.pipeline_mode<synchronous>, transform_indices = @transform_8, window_bounds = array<i64: 16, 64>}, {pipeline_mode = #tpu.pipeline_mode<synchronous>, transform_indices = @transform_9, window_bounds = array<i64: 1, 64>}, {pipeline_mode = #tpu.pipeline_mode<synchronous>, transform_indices = @transform_10, window_bounds = array<i64: 64, 32>}, {transform_indices = @transform_11, window_bounds = array<i64: 1, 64, 32>}]} {
    %c0_i32 = arith.constant 0 : i32
    %0 = arith.cmpi eq, %arg1, %c0_i32 : i32
    %1 = arith.extui %0 : i1 to i32
    %c0_i32_0 = arith.constant 0 : i32
    %2 = arith.cmpi ne, %1, %c0_i32_0 : i32
    scf.if %2 {
      %cst_69 = arith.constant 0.000000e+00 : f32
      %121 = vector.broadcast %cst_69 : f32 to vector<16x64xf32>
      %c0_70 = arith.constant 0 : index
      %c0_71 = arith.constant 0 : index
      %122 = vector.load %arg14[%c0_70, %c0_71] : memref<16x64xf32, #tpu.memory_space<vmem>>, vector<16x64xf32>
      tpu.vector_store %arg14[%c0_70, %c0_71], %121 {strides = array<i32>} : memref<16x64xf32, #tpu.memory_space<vmem>>, vector<16x64xf32>,
      %cst_72 = arith.constant 0.000000e+00 : f32
      %123 = vector.broadcast %cst_72 : f32 to vector<8x64xf32>
      %c0_73 = arith.constant 0 : index
      %c0_74 = arith.constant 0 : index
      %124 = vector.load %arg15[%c0_73, %c0_74] : memref<8x64xf32, #tpu.memory_space<vmem>>, vector<8x64xf32>
      tpu.vector_store %arg15[%c0_73, %c0_74], %123 {strides = array<i32>} : memref<8x64xf32, #tpu.memory_space<vmem>>, vector<8x64xf32>,
    } else {
    }
    %c0 = arith.constant 0 : index
    %c0_1 = arith.constant 0 : index
    %c0_2 = arith.constant 0 : index
    %3 = vector.load %arg2[%c0, %c0_1, %c0_2] : memref<1x64x32xf32, #tpu.memory_space<vmem>>, vector<1x64x32xf32>
    %4 = vector.shape_cast %3 : vector<1x64x32xf32> to vector<64x32xf32>
    %cst = arith.constant dense<0.000000e+00> : vector<64xf32>
    %5 = vector.multi_reduction <add>, %4, %cst [1] : vector<64x32xf32> to vector<64xf32>
    %6 = vector.shape_cast %5 : vector<64xf32> to vector<64x1xf32>
    %cst_3 = arith.constant 3.200000e+01 : f32
    %7 = vector.broadcast %cst_3 : f32 to vector<64x1xf32>
    %8 = arith.divf %6, %7 : vector<64x1xf32>
    %9 = vector.broadcast %8 : vector<64x1xf32> to vector<64x32xf32>
    %10 = arith.subf %4, %9 : vector<64x32xf32>
    %11 = arith.mulf %10, %10 : vector<64x32xf32>
    %cst_4 = arith.constant dense<0.000000e+00> : vector<64xf32>
    %12 = vector.multi_reduction <add>, %11, %cst_4 [1] : vector<64x32xf32> to vector<64xf32>
    %13 = vector.shape_cast %12 : vector<64xf32> to vector<64x1xf32>
    %cst_5 = arith.constant 3.200000e+01 : f32
    %14 = vector.broadcast %cst_5 : f32 to vector<64x1xf32>
    %15 = arith.divf %13, %14 : vector<64x1xf32>
    %cst_6 = arith.constant 9.99999974E-6 : f32
    %16 = vector.broadcast %cst_6 : f32 to vector<64x1xf32>
    %17 = arith.addf %15, %16 : vector<64x1xf32>
    %18 = math.rsqrt %17 : vector<64x1xf32>
    %19 = vector.broadcast %18 : vector<64x1xf32> to vector<64x32xf32>
    %20 = arith.mulf %10, %19 : vector<64x32xf32>
    %c0_7 = arith.constant 0 : index
    %c0_8 = arith.constant 0 : index
    %21 = vector.load %arg3[%c0_7, %c0_8] : memref<1x32xf32, #tpu.memory_space<vmem>>, vector<1x32xf32>
    %22 = vector.broadcast %21 : vector<1x32xf32> to vector<64x32xf32>
    %23 = arith.mulf %20, %22 : vector<64x32xf32>
    %c0_9 = arith.constant 0 : index
    %c0_10 = arith.constant 0 : index
    %24 = vector.load %arg4[%c0_9, %c0_10] : memref<1x32xf32, #tpu.memory_space<vmem>>, vector<1x32xf32>
    %25 = vector.broadcast %24 : vector<1x32xf32> to vector<64x32xf32>
    %26 = arith.addf %23, %25 : vector<64x32xf32>
    %27 = arith.truncf %26 : vector<64x32xf32> to vector<64x32xbf16>
    %c0_11 = arith.constant 0 : index
    %c0_12 = arith.constant 0 : index
    %28 = vector.load %arg5[%c0_11, %c0_12] : memref<32x128xbf16, #tpu.memory_space<vmem>>, vector<32x128xbf16>
    %cst_13 = arith.constant dense<0.000000e+00> : vector<64x128xf32>
    %29 = tpu.matmul %27, %28, %cst_13 {dimension_numbers = #tpu.dot_dimension_numbers<[1], [0], [0], [1], [0, 0, 1, 1], [], []>} : vector<64x32xbf16>, vector<32x128xbf16>, vector<64x128xf32> -> vector<64x128xf32>
    %30 = vector.extract_strided_slice %29 {offsets = [0, 0], sizes = [64, 64], strides = [1, 1]} : vector<64x128xf32> to vector<64x64xf32>
    %31 = vector.extract_strided_slice %29 {offsets = [0, 64], sizes = [64, 64], strides = [1, 1]} : vector<64x128xf32> to vector<64x64xf32>
    %c0_14 = arith.constant 0 : index
    %c0_15 = arith.constant 0 : index
    %32 = vector.load %arg15[%c0_14, %c0_15] : memref<8x64xf32, #tpu.memory_space<vmem>>, vector<8x64xf32>
    %c0_16 = arith.constant 0 : index
    %c0_17 = arith.constant 0 : index
    %33 = vector.load %arg16[%c0_16, %c0_17] : memref<72x64xf32, #tpu.memory_space<vmem>>, vector<8x64xf32>
    tpu.vector_store %arg16[%c0_16, %c0_17], %32 {strides = array<i32>} : memref<72x64xf32, #tpu.memory_space<vmem>>, vector<8x64xf32>,
    %c8 = arith.constant 8 : index
    %c0_18 = arith.constant 0 : index
    %34 = vector.load %arg16[%c8, %c0_18] : memref<72x64xf32, #tpu.memory_space<vmem>>, vector<64x64xf32>
    tpu.vector_store %arg16[%c8, %c0_18], %30 {strides = array<i32>} : memref<72x64xf32, #tpu.memory_space<vmem>>, vector<64x64xf32>,
    %35 = vector.extract_strided_slice %30 {offsets = [56, 0], sizes = [8, 64], strides = [1, 1]} : vector<64x64xf32> to vector<8x64xf32>
    %c0_19 = arith.constant 0 : index
    %c0_20 = arith.constant 0 : index
    %36 = vector.load %arg15[%c0_19, %c0_20] : memref<8x64xf32, #tpu.memory_space<vmem>>, vector<8x64xf32>
    tpu.vector_store %arg15[%c0_19, %c0_20], %35 {strides = array<i32>} : memref<8x64xf32, #tpu.memory_space<vmem>>, vector<8x64xf32>,
    %cst_21 = arith.constant 0.000000e+00 : f32
    %37 = vector.broadcast %cst_21 : f32 to vector<64x64xf32>
    %c5 = arith.constant 5 : index
    %c0_22 = arith.constant 0 : index
    %38 = vector.load %arg16[%c5, %c0_22] : memref<72x64xf32, #tpu.memory_space<vmem>>, vector<64x64xf32>
    %c0_23 = arith.constant 0 : index
    %c0_24 = arith.constant 0 : index
    %39 = vector.load %arg6[%c0_23, %c0_24] : memref<4x64xf32, #tpu.memory_space<vmem>>, vector<1x64xf32>
    %40 = vector.broadcast %39 : vector<1x64xf32> to vector<64x64xf32>
    %41 = arith.mulf %38, %40 : vector<64x64xf32>
    %42 = arith.addf %37, %41 : vector<64x64xf32>
    %c6 = arith.constant 6 : index
    %c0_25 = arith.constant 0 : index
    %43 = vector.load %arg16[%c6, %c0_25] : memref<72x64xf32, #tpu.memory_space<vmem>>, vector<64x64xf32>
    %c1 = arith.constant 1 : index
    %c0_26 = arith.constant 0 : index
    %44 = vector.load %arg6[%c1, %c0_26] : memref<4x64xf32, #tpu.memory_space<vmem>>, vector<1x64xf32>
    %45 = vector.broadcast %44 : vector<1x64xf32> to vector<64x64xf32>
    %46 = arith.mulf %43, %45 : vector<64x64xf32>
    %47 = arith.addf %42, %46 : vector<64x64xf32>
    %c7 = arith.constant 7 : index
    %c0_27 = arith.constant 0 : index
    %48 = vector.load %arg16[%c7, %c0_27] : memref<72x64xf32, #tpu.memory_space<vmem>>, vector<64x64xf32>
    %c2 = arith.constant 2 : index
    %c0_28 = arith.constant 0 : index
    %49 = vector.load %arg6[%c2, %c0_28] : memref<4x64xf32, #tpu.memory_space<vmem>>, vector<1x64xf32>
    %50 = vector.broadcast %49 : vector<1x64xf32> to vector<64x64xf32>
    %51 = arith.mulf %48, %50 : vector<64x64xf32>
    %52 = arith.addf %47, %51 : vector<64x64xf32>
    %c8_29 = arith.constant 8 : index
    %c0_30 = arith.constant 0 : index
    %53 = vector.load %arg16[%c8_29, %c0_30] : memref<72x64xf32, #tpu.memory_space<vmem>>, vector<64x64xf32>
    %c3 = arith.constant 3 : index
    %c0_31 = arith.constant 0 : index
    %54 = vector.load %arg6[%c3, %c0_31] : memref<4x64xf32, #tpu.memory_space<vmem>>, vector<1x64xf32>
    %55 = vector.broadcast %54 : vector<1x64xf32> to vector<64x64xf32>
    %56 = arith.mulf %53, %55 : vector<64x64xf32>
    %57 = arith.addf %52, %56 : vector<64x64xf32>
    %c0_32 = arith.constant 0 : index
    %c0_33 = arith.constant 0 : index
    %58 = vector.load %arg7[%c0_32, %c0_33] : memref<1x64xf32, #tpu.memory_space<vmem>>, vector<1x64xf32>
    %59 = vector.broadcast %58 : vector<1x64xf32> to vector<64x64xf32>
    %60 = arith.addf %57, %59 : vector<64x64xf32>
    %61 = arith.negf %60 : vector<64x64xf32>
    %62 = math.exp %61 : vector<64x64xf32>
    %cst_34 = arith.constant 1.000000e+00 : f32
    %63 = vector.broadcast %cst_34 : f32 to vector<64x64xf32>
    %64 = arith.addf %63, %62 : vector<64x64xf32>
    %65 = arith.divf %63, %64 : vector<64x64xf32>
    %66 = arith.mulf %60, %65 : vector<64x64xf32>
    %67 = arith.truncf %66 : vector<64x64xf32> to vector<64x64xbf16>
    %c0_35 = arith.constant 0 : index
    %c0_36 = arith.constant 0 : index
    %68 = vector.load %arg8[%c0_35, %c0_36] : memref<64x96xbf16, #tpu.memory_space<vmem>>, vector<64x96xbf16>
    %cst_37 = arith.constant dense<0.000000e+00> : vector<64x96xf32>
    %69 = tpu.matmul %67, %68, %cst_37 {dimension_numbers = #tpu.dot_dimension_numbers<[1], [0], [0], [1], [0, 0, 1, 1], [], []>} : vector<64x64xbf16>, vector<64x96xbf16>, vector<64x96xf32> -> vector<64x96xf32>
    %c0_38 = arith.constant 0 : index
    %c0_39 = arith.constant 0 : index
    %70 = vector.load %arg9[%c0_38, %c0_39] : memref<1x96xf32, #tpu.memory_space<vmem>>, vector<1x96xf32>
    %71 = vector.broadcast %70 : vector<1x96xf32> to vector<64x96xf32>
    %72 = arith.addf %69, %71 : vector<64x96xf32>
    %73 = vector.extract_strided_slice %72 {offsets = [0, 0], sizes = [64, 64], strides = [1, 1]} : vector<64x96xf32> to vector<64x64xf32>
    %cst_40 = arith.constant 0.000000e+00 : f32
    %74 = vector.broadcast %cst_40 : f32 to vector<64x64xf32>
    %75 = arith.maximumf %73, %74 : vector<64x64xf32>
    %76 = vector.broadcast %cst_40 : f32 to vector<64x64xf32>
    %77 = arith.subf %73, %76 : vector<64x64xf32>
    %78 = arith.cmpf one, %77, %77 : vector<64x64xf32>
    %79 = vector.broadcast %cst_40 : f32 to vector<64x64xf32>
    %80 = arith.addf %73, %79 : vector<64x64xf32>
    %81 = math.absf %77 : vector<64x64xf32>
    %cst_41 = arith.constant 0.000000e+00 : f32
    %82 = vector.broadcast %cst_41 : f32 to vector<64x64xf32>
    %83 = arith.subf %82, %81 : vector<64x64xf32>
    %84 = math.exp %83 : vector<64x64xf32>
    %85 = math.log1p %84 : vector<64x64xf32>
    %86 = arith.addf %75, %85 : vector<64x64xf32>
    %87 = arith.select %78, %80, %86 : vector<64x64xi1>, vector<64x64xf32>
    %c0_42 = arith.constant 0 : index
    %c0_43 = arith.constant 0 : index
    %88 = vector.load %arg17[%c0_42, %c0_43] : memref<64x64xf32, #tpu.memory_space<vmem>>, vector<64x64xf32>
    tpu.vector_store %arg17[%c0_42, %c0_43], %87 {strides = array<i32>} : memref<64x64xf32, #tpu.memory_space<vmem>>, vector<64x64xf32>,
    %89 = arith.mulf %87, %66 : vector<64x64xf32>
    %c0_44 = arith.constant 0 : index
    %c0_45 = arith.constant 0 : index
    %90 = vector.load %arg18[%c0_44, %c0_45] : memref<64x64xf32, #tpu.memory_space<vmem>>, vector<64x64xf32>
    tpu.vector_store %arg18[%c0_44, %c0_45], %89 {strides = array<i32>} : memref<64x64xf32, #tpu.memory_space<vmem>>, vector<64x64xf32>,
    %91 = vector.extract_strided_slice %72 {offsets = [0, 64], sizes = [64, 16], strides = [1, 1]} : vector<64x96xf32> to vector<64x16xf32>
    %c0_46 = arith.constant 0 : index
    %c0_47 = arith.constant 0 : index
    %92 = vector.load %arg19[%c0_46, %c0_47] : memref<64x16xf32, #tpu.memory_space<vmem>>, vector<64x16xf32>
    tpu.vector_store %arg19[%c0_46, %c0_47], %91 {strides = array<i32>} : memref<64x16xf32, #tpu.memory_space<vmem>>, vector<64x16xf32>,
    %93 = vector.extract_strided_slice %72 {offsets = [0, 80], sizes = [64, 16], strides = [1, 1]} : vector<64x96xf32> to vector<64x16xf32>
    %c0_48 = arith.constant 0 : index
    %c0_49 = arith.constant 0 : index
    %94 = vector.load %arg20[%c0_48, %c0_49] : memref<64x16xf32, #tpu.memory_space<vmem>>, vector<64x16xf32>
    tpu.vector_store %arg20[%c0_48, %c0_49], %93 {strides = array<i32>} : memref<64x16xf32, #tpu.memory_space<vmem>>, vector<64x16xf32>,
    %c0_50 = arith.constant 0 : index
    %c0_51 = arith.constant 0 : index
    %95 = vector.load %arg10[%c0_50, %c0_51] : memref<16x64xf32, #tpu.memory_space<vmem>>, vector<16x64xf32>
    %96 = tpu.iota {dimensions = array<i32: 0>} : vector<16x16xi32>
    %97 = tpu.iota {dimensions = array<i32: 1>} : vector<16x16xi32>
    %98 = arith.cmpi eq, %96, %97 : vector<16x16xi32>
    %c0_52 = arith.constant 0 : index
    %c0_53 = arith.constant 0 : index
    %99 = vector.load %arg14[%c0_52, %c0_53] : memref<16x64xf32, #tpu.memory_space<vmem>>, vector<16x64xf32>
    %c0_i32_54 = arith.constant 0 : i32
    %c8_i32 = arith.constant 8 : i32
    %100 = arith.addi %c0_i32_54, %c8_i32 : i32
    %c1_i32 = arith.constant 1 : i32
    %101 = scf.for %arg22 = %c0_i32_54 to %100 step %c1_i32 iter_args(%arg23 = %99) -> (vector<16x64xf32>)  : i32 {
      %c8_i32_69 = arith.constant 8 : i32
      %121 = arith.muli %arg22, %c8_i32_69 : i32
      %122 = tpu.assume_multiple %121, 8 : i32
      %c0_i32_70 = arith.constant 0 : i32
      %123 = arith.addi %122, %c0_i32_70 : i32
      %124 = arith.index_cast %123 : i32 to index
      %c0_71 = arith.constant 0 : index
      %125 = vector.load %arg17[%124, %c0_71] : memref<64x64xf32, #tpu.memory_space<vmem>>, vector<1x64xf32>
      %126 = arith.index_cast %123 : i32 to index
      %c0_72 = arith.constant 0 : index
      %127 = vector.load %arg18[%126, %c0_72] : memref<64x64xf32, #tpu.memory_space<vmem>>, vector<1x64xf32>
      %128 = arith.index_cast %123 : i32 to index
      %c0_73 = arith.constant 0 : index
      %129 = vector.load %arg19[%128, %c0_73] : memref<64x16xf32, #tpu.memory_space<vmem>>, vector<1x16xf32>
      %130 = arith.index_cast %123 : i32 to index
      %c0_74 = arith.constant 0 : index
      %131 = vector.load %arg20[%130, %c0_74] : memref<64x16xf32, #tpu.memory_space<vmem>>, vector<1x16xf32>
      %132 = vector.broadcast %125 : vector<1x64xf32> to vector<16x64xf32>
      %133 = arith.mulf %132, %95 : vector<16x64xf32>
      %134 = math.exp %133 : vector<16x64xf32>
      %135 = vector.shape_cast %129 : vector<1x16xf32> to vector<1x16xf32>
      %136 = vector.broadcast %135 : vector<1x16xf32> to vector<16x16xf32>
      %cst_75 = arith.constant 0.000000e+00 : f32
      %137 = vector.broadcast %cst_75 : f32 to vector<16x16xf32>
      %138 = arith.select %98, %136, %137 : vector<16x16xi1>, vector<16x16xf32>
      %cst_76 = arith.constant dense<0.000000e+00> : vector<16xf32>
      %139 = vector.multi_reduction <add>, %138, %cst_76 [1] : vector<16x16xf32> to vector<16xf32>
      %140 = vector.shape_cast %139 : vector<16xf32> to vector<16x1xf32>
      %141 = vector.broadcast %140 : vector<16x1xf32> to vector<16x64xf32>
      %142 = vector.broadcast %127 : vector<1x64xf32> to vector<16x64xf32>
      %143 = arith.mulf %141, %142 : vector<16x64xf32>
      %144 = arith.mulf %134, %arg23 : vector<16x64xf32>
      %145 = arith.addf %144, %143 : vector<16x64xf32>
      %cst_77 = arith.constant dense<0.000000e+00> : vector<1x64xf32>
      %146 = tpu.matmul %131, %145, %cst_77 {dimension_numbers = #tpu.dot_dimension_numbers<[1], [0], [0], [1], [0, 0, 1, 1], [], []>} : vector<1x16xf32>, vector<16x64xf32>, vector<1x64xf32> -> vector<1x64xf32>
      %147 = arith.index_cast %123 : i32 to index
      %c0_78 = arith.constant 0 : index
      %148 = vector.load %arg21[%147, %c0_78] : memref<64x64xf32, #tpu.memory_space<vmem>>, vector<1x64xf32>
      tpu.vector_store %arg21[%147, %c0_78], %146 {strides = array<i32>} : memref<64x64xf32, #tpu.memory_space<vmem>>, vector<1x64xf32>,
      %c1_i32_79 = arith.constant 1 : i32
      %149 = arith.addi %122, %c1_i32_79 : i32
      %150 = arith.index_cast %149 : i32 to index
      %c0_80 = arith.constant 0 : index
      %151 = vector.load %arg17[%150, %c0_80] : memref<64x64xf32, #tpu.memory_space<vmem>>, vector<1x64xf32>
      %152 = arith.index_cast %149 : i32 to index
      %c0_81 = arith.constant 0 : index
      %153 = vector.load %arg18[%152, %c0_81] : memref<64x64xf32, #tpu.memory_space<vmem>>, vector<1x64xf32>
      %154 = arith.index_cast %149 : i32 to index
      %c0_82 = arith.constant 0 : index
      %155 = vector.load %arg19[%154, %c0_82] : memref<64x16xf32, #tpu.memory_space<vmem>>, vector<1x16xf32>
      %156 = arith.index_cast %149 : i32 to index
      %c0_83 = arith.constant 0 : index
      %157 = vector.load %arg20[%156, %c0_83] : memref<64x16xf32, #tpu.memory_space<vmem>>, vector<1x16xf32>
      %158 = vector.broadcast %151 : vector<1x64xf32> to vector<16x64xf32>
      %159 = arith.mulf %158, %95 : vector<16x64xf32>
      %160 = math.exp %159 : vector<16x64xf32>
      %161 = vector.shape_cast %155 : vector<1x16xf32> to vector<1x16xf32>
      %162 = vector.broadcast %161 : vector<1x16xf32> to vector<16x16xf32>
      %cst_84 = arith.constant 0.000000e+00 : f32
      %163 = vector.broadcast %cst_84 : f32 to vector<16x16xf32>
      %164 = arith.select %98, %162, %163 : vector<16x16xi1>, vector<16x16xf32>
      %cst_85 = arith.constant dense<0.000000e+00> : vector<16xf32>
      %165 = vector.multi_reduction <add>, %164, %cst_85 [1] : vector<16x16xf32> to vector<16xf32>
      %166 = vector.shape_cast %165 : vector<16xf32> to vector<16x1xf32>
      %167 = vector.broadcast %166 : vector<16x1xf32> to vector<16x64xf32>
      %168 = vector.broadcast %153 : vector<1x64xf32> to vector<16x64xf32>
      %169 = arith.mulf %167, %168 : vector<16x64xf32>
      %170 = arith.mulf %160, %145 : vector<16x64xf32>
      %171 = arith.addf %170, %169 : vector<16x64xf32>
      %cst_86 = arith.constant dense<0.000000e+00> : vector<1x64xf32>
      %172 = tpu.matmul %157, %171, %cst_86 {dimension_numbers = #tpu.dot_dimension_numbers<[1], [0], [0], [1], [0, 0, 1, 1], [], []>} : vector<1x16xf32>, vector<16x64xf32>, vector<1x64xf32> -> vector<1x64xf32>
      %173 = arith.index_cast %149 : i32 to index
      %c0_87 = arith.constant 0 : index
      %174 = vector.load %arg21[%173, %c0_87] : memref<64x64xf32, #tpu.memory_space<vmem>>, vector<1x64xf32>
      tpu.vector_store %arg21[%173, %c0_87], %172 {strides = array<i32>} : memref<64x64xf32, #tpu.memory_space<vmem>>, vector<1x64xf32>,
      %c2_i32 = arith.constant 2 : i32
      %175 = arith.addi %122, %c2_i32 : i32
      %176 = arith.index_cast %175 : i32 to index
      %c0_88 = arith.constant 0 : index
      %177 = vector.load %arg17[%176, %c0_88] : memref<64x64xf32, #tpu.memory_space<vmem>>, vector<1x64xf32>
      %178 = arith.index_cast %175 : i32 to index
      %c0_89 = arith.constant 0 : index
      %179 = vector.load %arg18[%178, %c0_89] : memref<64x64xf32, #tpu.memory_space<vmem>>, vector<1x64xf32>
      %180 = arith.index_cast %175 : i32 to index
      %c0_90 = arith.constant 0 : index
      %181 = vector.load %arg19[%180, %c0_90] : memref<64x16xf32, #tpu.memory_space<vmem>>, vector<1x16xf32>
      %182 = arith.index_cast %175 : i32 to index
      %c0_91 = arith.constant 0 : index
      %183 = vector.load %arg20[%182, %c0_91] : memref<64x16xf32, #tpu.memory_space<vmem>>, vector<1x16xf32>
      %184 = vector.broadcast %177 : vector<1x64xf32> to vector<16x64xf32>
      %185 = arith.mulf %184, %95 : vector<16x64xf32>
      %186 = math.exp %185 : vector<16x64xf32>
      %187 = vector.shape_cast %181 : vector<1x16xf32> to vector<1x16xf32>
      %188 = vector.broadcast %187 : vector<1x16xf32> to vector<16x16xf32>
      %cst_92 = arith.constant 0.000000e+00 : f32
      %189 = vector.broadcast %cst_92 : f32 to vector<16x16xf32>
      %190 = arith.select %98, %188, %189 : vector<16x16xi1>, vector<16x16xf32>
      %cst_93 = arith.constant dense<0.000000e+00> : vector<16xf32>
      %191 = vector.multi_reduction <add>, %190, %cst_93 [1] : vector<16x16xf32> to vector<16xf32>
      %192 = vector.shape_cast %191 : vector<16xf32> to vector<16x1xf32>
      %193 = vector.broadcast %192 : vector<16x1xf32> to vector<16x64xf32>
      %194 = vector.broadcast %179 : vector<1x64xf32> to vector<16x64xf32>
      %195 = arith.mulf %193, %194 : vector<16x64xf32>
      %196 = arith.mulf %186, %171 : vector<16x64xf32>
      %197 = arith.addf %196, %195 : vector<16x64xf32>
      %cst_94 = arith.constant dense<0.000000e+00> : vector<1x64xf32>
      %198 = tpu.matmul %183, %197, %cst_94 {dimension_numbers = #tpu.dot_dimension_numbers<[1], [0], [0], [1], [0, 0, 1, 1], [], []>} : vector<1x16xf32>, vector<16x64xf32>, vector<1x64xf32> -> vector<1x64xf32>
      %199 = arith.index_cast %175 : i32 to index
      %c0_95 = arith.constant 0 : index
      %200 = vector.load %arg21[%199, %c0_95] : memref<64x64xf32, #tpu.memory_space<vmem>>, vector<1x64xf32>
      tpu.vector_store %arg21[%199, %c0_95], %198 {strides = array<i32>} : memref<64x64xf32, #tpu.memory_space<vmem>>, vector<1x64xf32>,
      %c3_i32 = arith.constant 3 : i32
      %201 = arith.addi %122, %c3_i32 : i32
      %202 = arith.index_cast %201 : i32 to index
      %c0_96 = arith.constant 0 : index
      %203 = vector.load %arg17[%202, %c0_96] : memref<64x64xf32, #tpu.memory_space<vmem>>, vector<1x64xf32>
      %204 = arith.index_cast %201 : i32 to index
      %c0_97 = arith.constant 0 : index
      %205 = vector.load %arg18[%204, %c0_97] : memref<64x64xf32, #tpu.memory_space<vmem>>, vector<1x64xf32>
      %206 = arith.index_cast %201 : i32 to index
      %c0_98 = arith.constant 0 : index
      %207 = vector.load %arg19[%206, %c0_98] : memref<64x16xf32, #tpu.memory_space<vmem>>, vector<1x16xf32>
      %208 = arith.index_cast %201 : i32 to index
      %c0_99 = arith.constant 0 : index
      %209 = vector.load %arg20[%208, %c0_99] : memref<64x16xf32, #tpu.memory_space<vmem>>, vector<1x16xf32>
      %210 = vector.broadcast %203 : vector<1x64xf32> to vector<16x64xf32>
      %211 = arith.mulf %210, %95 : vector<16x64xf32>
      %212 = math.exp %211 : vector<16x64xf32>
      %213 = vector.shape_cast %207 : vector<1x16xf32> to vector<1x16xf32>
      %214 = vector.broadcast %213 : vector<1x16xf32> to vector<16x16xf32>
      %cst_100 = arith.constant 0.000000e+00 : f32
      %215 = vector.broadcast %cst_100 : f32 to vector<16x16xf32>
      %216 = arith.select %98, %214, %215 : vector<16x16xi1>, vector<16x16xf32>
      %cst_101 = arith.constant dense<0.000000e+00> : vector<16xf32>
      %217 = vector.multi_reduction <add>, %216, %cst_101 [1] : vector<16x16xf32> to vector<16xf32>
      %218 = vector.shape_cast %217 : vector<16xf32> to vector<16x1xf32>
      %219 = vector.broadcast %218 : vector<16x1xf32> to vector<16x64xf32>
      %220 = vector.broadcast %205 : vector<1x64xf32> to vector<16x64xf32>
      %221 = arith.mulf %219, %220 : vector<16x64xf32>
      %222 = arith.mulf %212, %197 : vector<16x64xf32>
      %223 = arith.addf %222, %221 : vector<16x64xf32>
      %cst_102 = arith.constant dense<0.000000e+00> : vector<1x64xf32>
      %224 = tpu.matmul %209, %223, %cst_102 {dimension_numbers = #tpu.dot_dimension_numbers<[1], [0], [0], [1], [0, 0, 1, 1], [], []>} : vector<1x16xf32>, vector<16x64xf32>, vector<1x64xf32> -> vector<1x64xf32>
      %225 = arith.index_cast %201 : i32 to index
      %c0_103 = arith.constant 0 : index
      %226 = vector.load %arg21[%225, %c0_103] : memref<64x64xf32, #tpu.memory_space<vmem>>, vector<1x64xf32>
      tpu.vector_store %arg21[%225, %c0_103], %224 {strides = array<i32>} : memref<64x64xf32, #tpu.memory_space<vmem>>, vector<1x64xf32>,
      %c4_i32 = arith.constant 4 : i32
      %227 = arith.addi %122, %c4_i32 : i32
      %228 = arith.index_cast %227 : i32 to index
      %c0_104 = arith.constant 0 : index
      %229 = vector.load %arg17[%228, %c0_104] : memref<64x64xf32, #tpu.memory_space<vmem>>, vector<1x64xf32>
      %230 = arith.index_cast %227 : i32 to index
      %c0_105 = arith.constant 0 : index
      %231 = vector.load %arg18[%230, %c0_105] : memref<64x64xf32, #tpu.memory_space<vmem>>, vector<1x64xf32>
      %232 = arith.index_cast %227 : i32 to index
      %c0_106 = arith.constant 0 : index
      %233 = vector.load %arg19[%232, %c0_106] : memref<64x16xf32, #tpu.memory_space<vmem>>, vector<1x16xf32>
      %234 = arith.index_cast %227 : i32 to index
      %c0_107 = arith.constant 0 : index
      %235 = vector.load %arg20[%234, %c0_107] : memref<64x16xf32, #tpu.memory_space<vmem>>, vector<1x16xf32>
      %236 = vector.broadcast %229 : vector<1x64xf32> to vector<16x64xf32>
      %237 = arith.mulf %236, %95 : vector<16x64xf32>
      %238 = math.exp %237 : vector<16x64xf32>
      %239 = vector.shape_cast %233 : vector<1x16xf32> to vector<1x16xf32>
      %240 = vector.broadcast %239 : vector<1x16xf32> to vector<16x16xf32>
      %cst_108 = arith.constant 0.000000e+00 : f32
      %241 = vector.broadcast %cst_108 : f32 to vector<16x16xf32>
      %242 = arith.select %98, %240, %241 : vector<16x16xi1>, vector<16x16xf32>
      %cst_109 = arith.constant dense<0.000000e+00> : vector<16xf32>
      %243 = vector.multi_reduction <add>, %242, %cst_109 [1] : vector<16x16xf32> to vector<16xf32>
      %244 = vector.shape_cast %243 : vector<16xf32> to vector<16x1xf32>
      %245 = vector.broadcast %244 : vector<16x1xf32> to vector<16x64xf32>
      %246 = vector.broadcast %231 : vector<1x64xf32> to vector<16x64xf32>
      %247 = arith.mulf %245, %246 : vector<16x64xf32>
      %248 = arith.mulf %238, %223 : vector<16x64xf32>
      %249 = arith.addf %248, %247 : vector<16x64xf32>
      %cst_110 = arith.constant dense<0.000000e+00> : vector<1x64xf32>
      %250 = tpu.matmul %235, %249, %cst_110 {dimension_numbers = #tpu.dot_dimension_numbers<[1], [0], [0], [1], [0, 0, 1, 1], [], []>} : vector<1x16xf32>, vector<16x64xf32>, vector<1x64xf32> -> vector<1x64xf32>
      %251 = arith.index_cast %227 : i32 to index
      %c0_111 = arith.constant 0 : index
      %252 = vector.load %arg21[%251, %c0_111] : memref<64x64xf32, #tpu.memory_space<vmem>>, vector<1x64xf32>
      tpu.vector_store %arg21[%251, %c0_111], %250 {strides = array<i32>} : memref<64x64xf32, #tpu.memory_space<vmem>>, vector<1x64xf32>,
      %c5_i32 = arith.constant 5 : i32
      %253 = arith.addi %122, %c5_i32 : i32
      %254 = arith.index_cast %253 : i32 to index
      %c0_112 = arith.constant 0 : index
      %255 = vector.load %arg17[%254, %c0_112] : memref<64x64xf32, #tpu.memory_space<vmem>>, vector<1x64xf32>
      %256 = arith.index_cast %253 : i32 to index
      %c0_113 = arith.constant 0 : index
      %257 = vector.load %arg18[%256, %c0_113] : memref<64x64xf32, #tpu.memory_space<vmem>>, vector<1x64xf32>
      %258 = arith.index_cast %253 : i32 to index
      %c0_114 = arith.constant 0 : index
      %259 = vector.load %arg19[%258, %c0_114] : memref<64x16xf32, #tpu.memory_space<vmem>>, vector<1x16xf32>
      %260 = arith.index_cast %253 : i32 to index
      %c0_115 = arith.constant 0 : index
      %261 = vector.load %arg20[%260, %c0_115] : memref<64x16xf32, #tpu.memory_space<vmem>>, vector<1x16xf32>
      %262 = vector.broadcast %255 : vector<1x64xf32> to vector<16x64xf32>
      %263 = arith.mulf %262, %95 : vector<16x64xf32>
      %264 = math.exp %263 : vector<16x64xf32>
      %265 = vector.shape_cast %259 : vector<1x16xf32> to vector<1x16xf32>
      %266 = vector.broadcast %265 : vector<1x16xf32> to vector<16x16xf32>
      %cst_116 = arith.constant 0.000000e+00 : f32
      %267 = vector.broadcast %cst_116 : f32 to vector<16x16xf32>
      %268 = arith.select %98, %266, %267 : vector<16x16xi1>, vector<16x16xf32>
      %cst_117 = arith.constant dense<0.000000e+00> : vector<16xf32>
      %269 = vector.multi_reduction <add>, %268, %cst_117 [1] : vector<16x16xf32> to vector<16xf32>
      %270 = vector.shape_cast %269 : vector<16xf32> to vector<16x1xf32>
      %271 = vector.broadcast %270 : vector<16x1xf32> to vector<16x64xf32>
      %272 = vector.broadcast %257 : vector<1x64xf32> to vector<16x64xf32>
      %273 = arith.mulf %271, %272 : vector<16x64xf32>
      %274 = arith.mulf %264, %249 : vector<16x64xf32>
      %275 = arith.addf %274, %273 : vector<16x64xf32>
      %cst_118 = arith.constant dense<0.000000e+00> : vector<1x64xf32>
      %276 = tpu.matmul %261, %275, %cst_118 {dimension_numbers = #tpu.dot_dimension_numbers<[1], [0], [0], [1], [0, 0, 1, 1], [], []>} : vector<1x16xf32>, vector<16x64xf32>, vector<1x64xf32> -> vector<1x64xf32>
      %277 = arith.index_cast %253 : i32 to index
      %c0_119 = arith.constant 0 : index
      %278 = vector.load %arg21[%277, %c0_119] : memref<64x64xf32, #tpu.memory_space<vmem>>, vector<1x64xf32>
      tpu.vector_store %arg21[%277, %c0_119], %276 {strides = array<i32>} : memref<64x64xf32, #tpu.memory_space<vmem>>, vector<1x64xf32>,
      %c6_i32 = arith.constant 6 : i32
      %279 = arith.addi %122, %c6_i32 : i32
      %280 = arith.index_cast %279 : i32 to index
      %c0_120 = arith.constant 0 : index
      %281 = vector.load %arg17[%280, %c0_120] : memref<64x64xf32, #tpu.memory_space<vmem>>, vector<1x64xf32>
      %282 = arith.index_cast %279 : i32 to index
      %c0_121 = arith.constant 0 : index
      %283 = vector.load %arg18[%282, %c0_121] : memref<64x64xf32, #tpu.memory_space<vmem>>, vector<1x64xf32>
      %284 = arith.index_cast %279 : i32 to index
      %c0_122 = arith.constant 0 : index
      %285 = vector.load %arg19[%284, %c0_122] : memref<64x16xf32, #tpu.memory_space<vmem>>, vector<1x16xf32>
      %286 = arith.index_cast %279 : i32 to index
      %c0_123 = arith.constant 0 : index
      %287 = vector.load %arg20[%286, %c0_123] : memref<64x16xf32, #tpu.memory_space<vmem>>, vector<1x16xf32>
      %288 = vector.broadcast %281 : vector<1x64xf32> to vector<16x64xf32>
      %289 = arith.mulf %288, %95 : vector<16x64xf32>
      %290 = math.exp %289 : vector<16x64xf32>
      %291 = vector.shape_cast %285 : vector<1x16xf32> to vector<1x16xf32>
      %292 = vector.broadcast %291 : vector<1x16xf32> to vector<16x16xf32>
      %cst_124 = arith.constant 0.000000e+00 : f32
      %293 = vector.broadcast %cst_124 : f32 to vector<16x16xf32>
      %294 = arith.select %98, %292, %293 : vector<16x16xi1>, vector<16x16xf32>
      %cst_125 = arith.constant dense<0.000000e+00> : vector<16xf32>
      %295 = vector.multi_reduction <add>, %294, %cst_125 [1] : vector<16x16xf32> to vector<16xf32>
      %296 = vector.shape_cast %295 : vector<16xf32> to vector<16x1xf32>
      %297 = vector.broadcast %296 : vector<16x1xf32> to vector<16x64xf32>
      %298 = vector.broadcast %283 : vector<1x64xf32> to vector<16x64xf32>
      %299 = arith.mulf %297, %298 : vector<16x64xf32>
      %300 = arith.mulf %290, %275 : vector<16x64xf32>
      %301 = arith.addf %300, %299 : vector<16x64xf32>
      %cst_126 = arith.constant dense<0.000000e+00> : vector<1x64xf32>
      %302 = tpu.matmul %287, %301, %cst_126 {dimension_numbers = #tpu.dot_dimension_numbers<[1], [0], [0], [1], [0, 0, 1, 1], [], []>} : vector<1x16xf32>, vector<16x64xf32>, vector<1x64xf32> -> vector<1x64xf32>
      %303 = arith.index_cast %279 : i32 to index
      %c0_127 = arith.constant 0 : index
      %304 = vector.load %arg21[%303, %c0_127] : memref<64x64xf32, #tpu.memory_space<vmem>>, vector<1x64xf32>
      tpu.vector_store %arg21[%303, %c0_127], %302 {strides = array<i32>} : memref<64x64xf32, #tpu.memory_space<vmem>>, vector<1x64xf32>,
      %c7_i32 = arith.constant 7 : i32
      %305 = arith.addi %122, %c7_i32 : i32
      %306 = arith.index_cast %305 : i32 to index
      %c0_128 = arith.constant 0 : index
      %307 = vector.load %arg17[%306, %c0_128] : memref<64x64xf32, #tpu.memory_space<vmem>>, vector<1x64xf32>
      %308 = arith.index_cast %305 : i32 to index
      %c0_129 = arith.constant 0 : index
      %309 = vector.load %arg18[%308, %c0_129] : memref<64x64xf32, #tpu.memory_space<vmem>>, vector<1x64xf32>
      %310 = arith.index_cast %305 : i32 to index
      %c0_130 = arith.constant 0 : index
      %311 = vector.load %arg19[%310, %c0_130] : memref<64x16xf32, #tpu.memory_space<vmem>>, vector<1x16xf32>
      %312 = arith.index_cast %305 : i32 to index
      %c0_131 = arith.constant 0 : index
      %313 = vector.load %arg20[%312, %c0_131] : memref<64x16xf32, #tpu.memory_space<vmem>>, vector<1x16xf32>
      %314 = vector.broadcast %307 : vector<1x64xf32> to vector<16x64xf32>
      %315 = arith.mulf %314, %95 : vector<16x64xf32>
      %316 = math.exp %315 : vector<16x64xf32>
      %317 = vector.shape_cast %311 : vector<1x16xf32> to vector<1x16xf32>
      %318 = vector.broadcast %317 : vector<1x16xf32> to vector<16x16xf32>
      %cst_132 = arith.constant 0.000000e+00 : f32
      %319 = vector.broadcast %cst_132 : f32 to vector<16x16xf32>
      %320 = arith.select %98, %318, %319 : vector<16x16xi1>, vector<16x16xf32>
      %cst_133 = arith.constant dense<0.000000e+00> : vector<16xf32>
      %321 = vector.multi_reduction <add>, %320, %cst_133 [1] : vector<16x16xf32> to vector<16xf32>
      %322 = vector.shape_cast %321 : vector<16xf32> to vector<16x1xf32>
      %323 = vector.broadcast %322 : vector<16x1xf32> to vector<16x64xf32>
      %324 = vector.broadcast %309 : vector<1x64xf32> to vector<16x64xf32>
      %325 = arith.mulf %323, %324 : vector<16x64xf32>
      %326 = arith.mulf %316, %301 : vector<16x64xf32>
      %327 = arith.addf %326, %325 : vector<16x64xf32>
      %cst_134 = arith.constant dense<0.000000e+00> : vector<1x64xf32>
      %328 = tpu.matmul %313, %327, %cst_134 {dimension_numbers = #tpu.dot_dimension_numbers<[1], [0], [0], [1], [0, 0, 1, 1], [], []>} : vector<1x16xf32>, vector<16x64xf32>, vector<1x64xf32> -> vector<1x64xf32>
      %329 = arith.index_cast %305 : i32 to index
      %c0_135 = arith.constant 0 : index
      %330 = vector.load %arg21[%329, %c0_135] : memref<64x64xf32, #tpu.memory_space<vmem>>, vector<1x64xf32>
      tpu.vector_store %arg21[%329, %c0_135], %328 {strides = array<i32>} : memref<64x64xf32, #tpu.memory_space<vmem>>, vector<1x64xf32>,
      scf.yield %327 : vector<16x64xf32>
    }
    %c8_i32_55 = arith.constant 8 : i32
    %c0_56 = arith.constant 0 : index
    %c0_57 = arith.constant 0 : index
    %102 = vector.load %arg14[%c0_56, %c0_57] : memref<16x64xf32, #tpu.memory_space<vmem>>, vector<16x64xf32>
    tpu.vector_store %arg14[%c0_56, %c0_57], %101 {strides = array<i32>} : memref<16x64xf32, #tpu.memory_space<vmem>>, vector<16x64xf32>,
    %c0_58 = arith.constant 0 : index
    %c0_59 = arith.constant 0 : index
    %103 = vector.load %arg21[%c0_58, %c0_59] : memref<64x64xf32, #tpu.memory_space<vmem>>, vector<64x64xf32>
    %c0_60 = arith.constant 0 : index
    %c0_61 = arith.constant 0 : index
    %104 = vector.load %arg11[%c0_60, %c0_61] : memref<1x64xf32, #tpu.memory_space<vmem>>, vector<1x64xf32>
    %105 = vector.broadcast %104 : vector<1x64xf32> to vector<64x64xf32>
    %106 = arith.mulf %66, %105 : vector<64x64xf32>
    %107 = arith.addf %103, %106 : vector<64x64xf32>
    %108 = arith.negf %31 : vector<64x64xf32>
    %109 = math.exp %108 : vector<64x64xf32>
    %cst_62 = arith.constant 1.000000e+00 : f32
    %110 = vector.broadcast %cst_62 : f32 to vector<64x64xf32>
    %111 = arith.addf %110, %109 : vector<64x64xf32>
    %112 = arith.divf %110, %111 : vector<64x64xf32>
    %113 = arith.mulf %31, %112 : vector<64x64xf32>
    %114 = arith.mulf %107, %113 : vector<64x64xf32>
    %115 = arith.truncf %114 : vector<64x64xf32> to vector<64x64xbf16>
    %c0_63 = arith.constant 0 : index
    %c0_64 = arith.constant 0 : index
    %116 = vector.load %arg12[%c0_63, %c0_64] : memref<64x32xbf16, #tpu.memory_space<vmem>>, vector<64x32xbf16>
    %cst_65 = arith.constant dense<0.000000e+00> : vector<64x32xf32>
    %117 = tpu.matmul %115, %116, %cst_65 {dimension_numbers = #tpu.dot_dimension_numbers<[1], [0], [0], [1], [0, 0, 1, 1], [], []>} : vector<64x64xbf16>, vector<64x32xbf16>, vector<64x32xf32> -> vector<64x32xf32>
    %c0_66 = arith.constant 0 : index
    %c0_67 = arith.constant 0 : index
    %c0_68 = arith.constant 0 : index
    %118 = vector.load %arg13[%c0_66, %c0_67, %c0_68] : memref<1x64x32xf32, #tpu.memory_space<vmem>>, vector<1x64x32xf32>
    %119 = vector.shape_cast %118 : vector<1x64x32xf32> to vector<64x32xf32>
    %120 = vector.shape_cast %117 : vector<64x32xf32> to vector<1x64x32xf32>
    tpu.vector_store %arg13[%c0_66, %c0_67, %c0_68], %120 {strides = array<i32>} : memref<1x64x32xf32, #tpu.memory_space<vmem>>, vector<1x64x32xf32>,
    return
  }
  func.func @transform_0(%arg0: i32, %arg1: i32) -> (i32, i32, i32) {
    %c0_i32 = arith.constant 0 : i32
    %c0_i32_0 = arith.constant 0 : i32
    return %arg0, %arg1, %c0_i32 : i32, i32, i32
  }
  func.func @transform_1(%arg0: i32, %arg1: i32) -> (i32, i32) {
    %c0_i32 = arith.constant 0 : i32
    %c0_i32_0 = arith.constant 0 : i32
    %c0_i32_1 = arith.constant 0 : i32
    return %c0_i32, %c0_i32_0 : i32, i32
  }
  func.func @transform_2(%arg0: i32, %arg1: i32) -> (i32, i32) {
    %c0_i32 = arith.constant 0 : i32
    %c0_i32_0 = arith.constant 0 : i32
    %c0_i32_1 = arith.constant 0 : i32
    return %c0_i32, %c0_i32_0 : i32, i32
  }
  func.func @transform_3(%arg0: i32, %arg1: i32) -> (i32, i32) {
    %c0_i32 = arith.constant 0 : i32
    %c0_i32_0 = arith.constant 0 : i32
    %c0_i32_1 = arith.constant 0 : i32
    return %c0_i32, %c0_i32_0 : i32, i32
  }
  func.func @transform_4(%arg0: i32, %arg1: i32) -> (i32, i32) {
    %c0_i32 = arith.constant 0 : i32
    %c0_i32_0 = arith.constant 0 : i32
    %c0_i32_1 = arith.constant 0 : i32
    return %c0_i32, %c0_i32_0 : i32, i32
  }
  func.func @transform_5(%arg0: i32, %arg1: i32) -> (i32, i32) {
    %c0_i32 = arith.constant 0 : i32
    %c0_i32_0 = arith.constant 0 : i32
    %c0_i32_1 = arith.constant 0 : i32
    return %c0_i32, %c0_i32_0 : i32, i32
  }
  func.func @transform_6(%arg0: i32, %arg1: i32) -> (i32, i32) {
    %c0_i32 = arith.constant 0 : i32
    %c0_i32_0 = arith.constant 0 : i32
    %c0_i32_1 = arith.constant 0 : i32
    return %c0_i32, %c0_i32_0 : i32, i32
  }
  func.func @transform_7(%arg0: i32, %arg1: i32) -> (i32, i32) {
    %c0_i32 = arith.constant 0 : i32
    %c0_i32_0 = arith.constant 0 : i32
    %c0_i32_1 = arith.constant 0 : i32
    return %c0_i32, %c0_i32_0 : i32, i32
  }
  func.func @transform_8(%arg0: i32, %arg1: i32) -> (i32, i32) {
    %c0_i32 = arith.constant 0 : i32
    %c0_i32_0 = arith.constant 0 : i32
    %c0_i32_1 = arith.constant 0 : i32
    return %c0_i32, %c0_i32_0 : i32, i32
  }
  func.func @transform_9(%arg0: i32, %arg1: i32) -> (i32, i32) {
    %c0_i32 = arith.constant 0 : i32
    %c0_i32_0 = arith.constant 0 : i32
    %c0_i32_1 = arith.constant 0 : i32
    return %c0_i32, %c0_i32_0 : i32, i32
  }
  func.func @transform_10(%arg0: i32, %arg1: i32) -> (i32, i32) {
    %c0_i32 = arith.constant 0 : i32
    %c0_i32_0 = arith.constant 0 : i32
    %c0_i32_1 = arith.constant 0 : i32
    return %c0_i32, %c0_i32_0 : i32, i32
  }
  func.func @transform_11(%arg0: i32, %arg1: i32) -> (i32, i32, i32) {
    %c0_i32 = arith.constant 0 : i32
    %c0_i32_0 = arith.constant 0 : i32
    return %arg0, %arg1, %c0_i32 : i32, i32, i32
  }
}

</mosaic_0001>

<bundles_post_ra>
// kernel: tpu_custom_call.1
= control target key start
LH: loop header
LB: loop body
LE: loop exit
PB: predicated region body
PF: predicated region fallthrough
CT: control target
= control target key end

     0   :  { %s3346_s17 = smov 0   ;;  %s3348_s18 = smov 0   ;;  %s4073_s0 = inlined_call_operand.vmem [shape: f32[2,256,32], index: 0, kind: input, shape index: {}]   ;;  %s4074_s1 = inlined_call_operand.vmem [shape: f32[1,32], index: 1, kind: input, shape index: {}]   ;;  %s4075_s2 = inlined_call_operand.vmem [shape: f32[1,32], index: 2, kind: input, shape index: {}]   ;;  %s4076_s3 = inlined_call_operand.vmem [shape: bf16[32,128], index: 3, kind: input, shape index: {}]   ;;  %s4077_s4 = inlined_call_operand.vmem [shape: f32[4,64], index: 4, kind: input, shape index: {}]   ;;  %s4078_s5 = inlined_call_operand.vmem [shape: f32[1,64], index: 5, kind: input, shape index: {}]   ;;  %s4079_s6 = inlined_call_operand.vmem [shape: bf16[64,96], index: 6, kind: input, shape index: {}]   ;;  %s4080_s7 = inlined_call_operand.vmem [shape: f32[1,96], index: 7, kind: input, shape index: {}]   ;;  %s4081_s8 = inlined_call_operand.vmem [shape: f32[16,64], index: 8, kind: input, shape index: {}]   ;;  %s4082_s9 = inlined_call_operand.vmem [shape: f32[1,64], index: 9, kind: input, shape index: {}]   ;;  %s4083_s10 = inlined_call_operand.vmem [shape: bf16[64,32], index: 10, kind: input, shape index: {}]   ;;  %s4084_s11 = inlined_call_operand.vmem [shape: f32[2,256,32], index: 11, kind: output, shape index: {}]  }
   0x1   :  { %s3350_s19 = smov 0   ;;  %s3352_s20 = smov 0  }
   0x2   :  { %s3354_s21 = smov 0  }
   0x3 LB: > { %s30_s22 = sadd.s32 1, %s3258_s19  ;;  %s33_s23 = sadd.s32 1, %s3262_s20  ;;  %s3266_s21 = sphi %s3354_s21, %s21_s21   ;;  %s3262_s20 = sphi %s3352_s20, %s4098_s20   ;;  %s3258_s19 = sphi %s3350_s19, %s4097_s19   ;;  %s3254_s18 = sphi %s3348_s18, %s4096_s18   ;;  %s3250_s17 = sphi %s3346_s17, %s4095_s17  }
   0x4   : > { %p31_p0 = scmp.ge.s32.totalorder %s30_s22, 4  ;;  %p2654_p1 = scmp.ge.s32.totalorder %s3266_s21, 1 }
   0x5   : > { %p358_p2 = scmp.lt.s32.totalorder %s3266_s21, 9 }
   0x6   : > { %s4100_s22 = smov (%p31_p0, %s30_s22), 0  ;;  %s4102_s23 = smov (!%p31_p0, %s33_s23), %s3262_s20 }
   0x7   : > { %p359_p3 = pnand %p2654_p1, %p358_p2  ;;  %p35_p4 = scmp.ge.s32.totalorder %s4102_s23, 2 }
   0x8   : > { %s2655_s24 = sshll.u32 (!%p359_p3), %s3250_s17, 3  ;;  %p407_p5 = scmp.lt.s32.totalorder (!%p359_p3), %s3254_s18, 1 }
   0x9   : > { %s4104_s23 = smov (%p35_p4, %s4102_s23), 0  ;;  %362 = sbr.rel (%p359_p3) target bundleno = 1703 (0x6a7), region = 64 }
   0xa   : > { %p409_p6 = scmp.lt.s32.totalorder (!%p359_p3), %s2655_s24, 31  ;;  %p2661_p7 = scmp.ne.s32.totalorder (!%p359_p3), %s3250_s17, 0 }
  0x10   : > { %s4106_s18 = smov (!%p407_p5, %s3254_s18), 1  ;;  %s4108_s24 = smov (!%p409_p6, %s2655_s24), 31 }
  0x11   : > { %s2656_s25 = sshll.u32 %s4106_s18, 5  ;;  %430 = sbr.rel (%p2661_p7) target bundleno = 24 (0x18), region = 68  ;;  %vm431_vm0 = vcmask (!%p2661_p7), 523264   ;;  %v3280_v0 = vmov (!%p2661_p7), 0.0  }
  0x12   : > { %s412_s26 = sadd.s32 %s2656_s25, %s4108_s24  ;;  %432 = vst.msk [vmem:[#allocation2] sm:$0xff] (!%p2661_p7), %vm431_vm0, %v3280_v0  ;;  %433 = vst.msk [vmem:[#allocation2 + $0x8] sm:$0xff] (!%p2661_p7), %vm431_vm0, %v3280_v0 }
  0x13   : > { %s2657_s27 = sshll.u32 %s412_s26, 3  ;;  %434 = vst.msk [vmem:[#allocation3] sm:$0xff] (!%p2661_p7), %vm431_vm0, %v3280_v0 }
  0x14   : > { %s414_s30 = scalar_lea.vmem %s4073_s0, %s2657_s27  ;;  %s3382_s14 = scalar_lea.vmem %s4084_s11, %s2657_s27 }
  0x18 PF: > { %v435_v1 = vld [vmem:[%s414_s30] sm:$0xff]  ;;  %vm443_vm1 = vcmask 261120   ;;  %v437_v2 = vld [vmem:[%s414_s30 + $0x10] sm:$0xff]  ;;  %v436_v3 = vld [vmem:[%s414_s30 + $0x8] sm:$0xff]  ;;  %vm677_vm2 = vcmask 523264   ;;  %s3281_s17 = smov 48  }
  0x19   : > { %v444_v4 = vsel %vm443_vm1, %v435_v1, 0.0  ;;  %v450_v5 = vsel %vm443_vm1, %v437_v2, 0.0  ;;  %v438_v6 = vld [vmem:[%s414_s30 + $0x18] sm:$0xff]  ;;  %v447_v7 = vsel %vm443_vm1, %v436_v3, 0.0  ;;  %v439_v8 = vld [vmem:[%s414_s30 + $0x20] sm:$0xff]  ;;  %v440_v10 = vld [vmem:[%s414_s30 + $0x28] sm:$0xff] }
  0x1a   : > { %445 = vadd.xlane.f32.xlu0 %v444_v4  ;;  %451 = vadd.xlane.f32.xlu1 %v450_v5  ;;  %v453_v9 = vsel %vm443_vm1, %v438_v6, 0.0  ;;  %v456_v11 = vsel %vm443_vm1, %v439_v8, 0.0  ;;  %v459_v12 = vsel %vm443_vm1, %v440_v10, 0.0  ;;  %v441_v13 = vld [vmem:[%s414_s30 + $0x30] sm:$0xff]  ;;  %v442_v14 = vld [vmem:[%s414_s30 + $0x38] sm:$0xff]  ;;  %v3062_v57 = vld [vmem:[%s4076_s3] sm:$0xff]  }
  0x1b   : > { %v462_v15 = vsel %vm443_vm1, %v441_v13, 0.0  ;;  %v465_v16 = vsel %vm443_vm1, %v442_v14, 0.0  ;;  %2860 = vmatprep.subr.bf16.mxu0 %v3062_v57  ;;  %v3063_v58 = vld [vmem:[%s4076_s3 + $0x8] sm:$0xff]   ;;  %s3282_s18 = smov 64   ;;  %s3817_s28 = smov 0  }
  0x1c   : > { %2861 = vmatpush3.bf16.msra.mxu0 %v3062_v57 }
  0x1d   : > { %2862 = vmatprep.subr.bf16.mxu0 %v3063_v58 }
  0x1e   : > { %448 = vadd.xlane.f32.xlu0 %v447_v7  ;;  %454 = vadd.xlane.f32.xlu1 %v453_v9 }
  0x20   : > { %2863 = vmatpush3.bf16.msra.mxu0 %v3063_v58 }
  0x22   : > { %457 = vadd.xlane.f32.xlu0 %v456_v11  ;;  %460 = vadd.xlane.f32.xlu1 %v459_v12 }
  0x26   : > { %463 = vadd.xlane.f32.xlu0 %v462_v15  ;;  %466 = vadd.xlane.f32.xlu1 %v465_v16 }
  0xa7   : > { %v446_v17 = vpop.xlane.xlu0 %445  ;;  %v452_v18 = vpop.xlane.xlu1 %451 }
  0xa8   : > { %v469_v19 = vmul.f32 0.03125, %v446_v17  ;;  %v471_v20 = vmul.f32 0.03125, %v452_v18 }
  0xaa   : > { %v3392_v21 = vsub.f32 %v435_v1, %v469_v19  ;;  %v3394_v22 = vsub.f32 %v437_v2, %v471_v20  ;;  %v2662_v20 = vld [vmem:[%s4074_s1] ss:$0 sm:$0xff] }
  0xab   : > { %v449_v23 = vpop.xlane.xlu0 %448  ;;  %v455_v24 = vpop.xlane.xlu1 %454 }
  0xac   : > { %v470_v25 = vmul.f32 0.03125, %v449_v23  ;;  %v472_v26 = vmul.f32 0.03125, %v455_v24  ;;  %v485_v27 = vmul.f32 %v3392_v21, %v3392_v21  ;;  %v487_v28 = vmul.f32 %v3394_v22, %v3394_v22 }
  0xae   : > { %v3400_v29 = vsub.f32 %v436_v3, %v470_v25  ;;  %v3402_v30 = vsub.f32 %v438_v6, %v472_v26  ;;  %v493_v31 = vsel %vm443_vm1, %v485_v27, 0.0  ;;  %v499_v34 = vsel %vm443_vm1, %v487_v28, 0.0 }
  0xaf   : > { %494 = vadd.xlane.f32.xlu0 %v493_v31  ;;  %v458_v32 = vpop.xlane.xlu0 %457  ;;  %v461_v33 = vpop.xlane.xlu1 %460 }
  0xb0   : > { %v473_v35 = vmul.f32 0.03125, %v458_v32  ;;  %v474_v36 = vmul.f32 0.03125, %v461_v33  ;;  %v486_v37 = vmul.f32 %v3400_v29, %v3400_v29  ;;  %v488_v38 = vmul.f32 %v3402_v30, %v3402_v30 }
  0xb2   : > { %v3410_v39 = vsub.f32 %v439_v8, %v473_v35  ;;  %v3412_v40 = vsub.f32 %v440_v10, %v474_v36  ;;  %v496_v41 = vsel %vm443_vm1, %v486_v37, 0.0  ;;  %v502_v44 = vsel %vm443_vm1, %v488_v38, 0.0 }
  0xb3   : > { %500 = vadd.xlane.f32.xlu0 %v499_v34  ;;  %497 = vadd.xlane.f32.xlu1 %v496_v41  ;;  %v464_v42 = vpop.xlane.xlu0 %463  ;;  %v467_v43 = vpop.xlane.xlu1 %466 }
  0xb4   : > { %v475_v45 = vmul.f32 0.03125, %v464_v42  ;;  %v476_v46 = vmul.f32 0.03125, %v467_v43  ;;  %v489_v47 = vmul.f32 %v3410_v39, %v3410_v39  ;;  %v490_v48 = vmul.f32 %v3412_v40, %v3412_v40 }
  0xb6   : > { %v3420_v49 = vsub.f32 %v441_v13, %v475_v45  ;;  %v3422_v50 = vsub.f32 %v442_v14, %v476_v46  ;;  %v505_v51 = vsel %vm443_vm1, %v489_v47, 0.0  ;;  %v508_v52 = vsel %vm443_vm1, %v490_v48, 0.0 }
  0xb7   : > { %503 = vadd.xlane.f32.xlu1 %v502_v44  ;;  %506 = vadd.xlane.f32.xlu0 %v505_v51 }
  0xb8   : > { %v491_v53 = vmul.f32 %v3420_v49, %v3420_v49  ;;  %v492_v54 = vmul.f32 %v3422_v50, %v3422_v50 }
  0xba   : > { %v511_v55 = vsel %vm443_vm1, %v491_v53, 0.0  ;;  %v514_v56 = vsel %vm443_vm1, %v492_v54, 0.0 }
  0xbb   : > { %509 = vadd.xlane.f32.xlu1 %v508_v52  ;;  %512 = vadd.xlane.f32.xlu0 %v511_v55 }
  0xbf   : > { %515 = vadd.xlane.f32.xlu1 %v514_v56 }
 0x13c   : > { %v495_v59 = vpop.xlane.xlu0 %494 }
 0x13d   : > { %v517_v60 = vmul.f32 0.03125, %v495_v59  ;;  %v3065_v59 = vld [vmem:[%s4079_s6 + $0x8] sm:$0xff]  }
 0x13f   : > { %v525_v61 = vadd.f32 1e-05, %v517_v60  ;;  %v3066_v60 = vld [vmem:[%s4079_s6 + $0x10] sm:$0xff]  }
 0x140   : > { %v498_v62 = vpop.xlane.xlu1 %497  ;;  %v501_v63 = vpop.xlane.xlu0 %500 }
 0x141   : > { %3068 = vrsqrt.f32 %v525_v61  ;;  %v518_v0 = vmul.f32 0.03125, %v498_v62  ;;  %v519_v1 = vmul.f32 0.03125, %v501_v63  ;;  %v3067_v61 = vld [vmem:[%s4079_s6 + $0x18] sm:$0xff]  }
 0x143   : > { %v526_v2 = vadd.f32 1e-05, %v518_v0  ;;  %v527_v3 = vadd.f32 1e-05, %v519_v1 }
 0x144   : > { %v504_v4 = vpop.xlane.xlu1 %503  ;;  %v507_v5 = vpop.xlane.xlu0 %506 }
 0x145   : > { %3070 = vrsqrt.f32 %v526_v2  ;;  %v520_v6 = vmul.f32 0.03125, %v504_v4  ;;  %v521_v7 = vmul.f32 0.03125, %v507_v5  ;;  %v3488_v2 = vld [vmem:[%s4077_s4] ss:$0 sm:$0xff]  ;;  %v3500_v5 = vld [vmem:[%s4077_s4 + $0x2] ss:$0 sm:$0xff] }
 0x146   : > { %3072 = vrsqrt.f32 %v527_v3  ;;  %v3493_v3 = vld [vmem:[%s4077_s4 + $0x1] ss:$0 sm:$0xff] }
 0x147   : > { %v528_v8 = vadd.f32 1e-05, %v520_v6  ;;  %v529_v9 = vadd.f32 1e-05, %v521_v7  ;;  %v3505_v6 = vld [vmem:[%s4077_s4 + $0x3] ss:$0 sm:$0xff] }
 0x148   : > { %v510_v10 = vpop.xlane.xlu1 %509  ;;  %v513_v11 = vpop.xlane.xlu0 %512 }
 0x149   : > { %3074 = vrsqrt.f32 %v528_v8  ;;  %v522_v12 = vmul.f32 0.03125, %v510_v10  ;;  %v523_v13 = vmul.f32 0.03125, %v513_v11 }
 0x14a   : > { %3076 = vrsqrt.f32 %v529_v9 }
 0x14b   : > { %v3069_v14 = vpop.eup %3068  ;;  %v530_v15 = vadd.f32 1e-05, %v522_v12  ;;  %v531_v16 = vadd.f32 1e-05, %v523_v13 }
 0x14c   : > { %v516_v17 = vpop.xlane.xlu1 %515  ;;  %v541_v18 = vmul.f32 %v3069_v14, %v3392_v21  ;;  %v2663_v21 = vld [vmem:[%s4075_s2] ss:$0 sm:$0xff] }
 0x14d   : > { %3078 = vrsqrt.f32 %v530_v15  ;;  %v524_v19 = vmul.f32 0.03125, %v516_v17 }
 0x14e   : > { %3080 = vrsqrt.f32 %v531_v16  ;;  %v556_v27 = vmul.f32 %v2662_v20, %v541_v18 }
 0x14f   : > { %v3071_v23 = vpop.eup %3070  ;;  %v532_v24 = vadd.f32 1e-05, %v524_v19 }
 0x150   : > { %v3073_v25 = vpop.eup %3072  ;;  %v542_v26 = vmul.f32 %v3071_v23, %v3400_v29  ;;  %v571_v35 = vadd.f32 %v2663_v21, %v556_v27 }
 0x151   : > { %v543_v28 = vmul.f32 %v3073_v25, %v3394_v22  ;;  %3082 = vrsqrt.f32 %v532_v24 }
 0x152   : > { %v557_v31 = vmul.f32 %v2662_v20, %v542_v26 }
 0x153   : > { %v3075_v32 = vpop.eup %3074  ;;  %v558_v37 = vmul.f32 %v2662_v20, %v543_v28 }
 0x154   : > { %v3077_v33 = vpop.eup %3076  ;;  %v544_v34 = vmul.f32 %v3075_v32, %v3402_v30  ;;  %v572_v36 = vadd.f32 %v2663_v21, %v557_v31 }
 0x155   : > { %v545_v38 = vmul.f32 %v3077_v33, %v3410_v39  ;;  %v573_v44 = vadd.f32 %v2663_v21, %v558_v37 }
 0x156   : > { %v579_v41 = vpack.c.bf16 %v572_v36, %v571_v35  ;;  %v559_v29 = vmul.f32 %v2662_v20, %v544_v34 }
 0x157   : > { %v3079_v42 = vpop.eup %3078  ;;  %v560_v46 = vmul.f32 %v2662_v20, %v545_v38 }
 0x158   : > { %v3081_v43 = vpop.eup %3080  ;;  %v546_v22 = vmul.f32 %v3079_v42, %v3412_v40  ;;  %2864 = vmatprep.mubr.msk.bf16.mxu0 %vm443_vm1, %v579_v41  ;;  %v574_v45 = vadd.f32 %v2663_v21, %v559_v29 }
 0x159   : > { %v547_v47 = vmul.f32 %v3081_v43, %v3420_v49  ;;  %v575_v39 = vadd.f32 %v2663_v21, %v560_v46  ;;  %v676_v49 = vld [vmem:[#allocation3] sm:$0xff]  ;;  %v3539_v46 = vld [vmem:[%s4078_s5] ss:$0 sm:$0xff] }
 0x15a   : > { %v580_v48 = vpack.c.bf16 %v574_v45, %v573_v44  ;;  %v561_v30 = vmul.f32 %v2662_v20, %v546_v22  ;;  %678 = vst.msk [vmem:[#allocation4] sm:$0xff] %vm677_vm2, %v676_v49 }
 0x15b   : > { %v3083_v51 = vpop.eup %3082  ;;  %v562_v54 = vmul.f32 %v2662_v20, %v547_v47 }
 0x15c   : > { %v548_v52 = vmul.f32 %v3083_v51, %v3422_v50  ;;  %2865 = vmatmul.mubr.msk.bf16.vlgmr.msra.gmra.mrb[0].mxu0 %vm443_vm1, %v580_v48  ;;  %v576_v53 = vadd.f32 %v2663_v21, %v561_v30  ;;  %v3064_v50 = vld [vmem:[%s4079_s6] sm:$0xff]  }
 0x15d   : > { %v577_v40 = vadd.f32 %v2663_v21, %v562_v54  ;;  %2872 = vmatprep.subr.bf16.mxu1 %v3064_v50 }
 0x15e   : > { %v581_v55 = vpack.c.bf16 %v576_v53, %v575_v39  ;;  %v563_v56 = vmul.f32 %v2662_v20, %v548_v52  ;;  %2873 = vmatpush3.bf16.msra.mxu1 %v3064_v50 }
 0x15f   : > { %2874 = vmatprep.subr.bf16.mxu1 %v3065_v59 }
 0x160   : > { %2868 = vmatprep.mubr.msk.bf16.mxu0 %vm443_vm1, %v581_v55  ;;  %v578_v57 = vadd.f32 %v2663_v21, %v563_v56 }
 0x162   : > { %v582_v58 = vpack.c.bf16 %v578_v57, %v577_v40  ;;  %2875 = vmatpush3.bf16.msra.mxu1 %v3065_v59 }
 0x163   : > { %2876 = vmatprep.subr.bf16.mxu1 %v3066_v60 }
 0x164   : > { %2869 = vmatmul.mubr.msk.bf16.gmra.mrb[4].mxu0 %vm443_vm1, %v582_v58 }
 0x166   : > { %2877 = vmatpush3.bf16.msra.mxu1 %v3066_v60 }
 0x167   : > { %2878 = vmatprep.subr.bf16.mxu1 %v3067_v61 }
 0x16a   : > { %2879 = vmatpush3.bf16.msra.mxu1 %v3067_v61 }
 0x22f   : > { %v3469_v62 = vpop.f32.mrb[0].mxu0 }
 0x230   : > { %681 = vst.msk [vmem:[#allocation4 + $0x18] sm:$0xff] %vm677_vm2, %v3469_v62  ;;  %v3473_v63 = vpop.f32.mrb[1].mxu0 }
 0x231   : > { %679 = vst.msk [vmem:[#allocation4 + $0x8] sm:$0xff] %vm677_vm2, %v3473_v63  ;;  %v3477_v0 = vpop.f32.mrb[2].mxu0 }
 0x232   : > { %682 = vst.msk [vmem:[#allocation4 + $0x20] sm:$0xff] %vm677_vm2, %v3477_v0  ;;  %v3481_v1 = vpop.f32.mrb[3].mxu0 }
 0x233   : > { %680 = vst.msk [vmem:[#allocation4 + $0x10] sm:$0xff] %vm677_vm2, %v3481_v1 }
 0x237   : > { %v3495_v4 = vpop.f32.mrb[4].mxu0  ;;  %v777_v44 = vld [vmem:[#allocation4 + $0x18] sm:$0xff] }
 0x238   : > { %685 = vst.msk [vmem:[#allocation4 + $0x38] sm:$0xff] %vm677_vm2, %v3495_v4  ;;  %v3509_v7 = vpop.f32.mrb[5].mxu0  ;;  %v688_v8 = vld [vmem:[#allocation4 + $0x5] sm:$0xff]  ;;  %v790_v54 = vmul.f32 %v3505_v6, %v777_v44 }
 0x239   : > { %v717_v9 = vld [vmem:[#allocation4 + $0x6] sm:$0xff]  ;;  %683 = vst.msk [vmem:[#allocation4 + $0x28] sm:$0xff] %vm677_vm2, %v3509_v7  ;;  %v3513_v11 = vpop.f32.mrb[6].mxu0  ;;  %v701_v12 = vmul.f32 %v3488_v2, %v688_v8  ;;  %v691_v15 = vld [vmem:[#allocation4 + $0x1d] sm:$0xff] }
 0x23a   : > { %v746_v10 = vld [vmem:[#allocation4 + $0x7] sm:$0xff]  ;;  %v730_v13 = vmul.f32 %v3493_v3, %v717_v9  ;;  %v720_v16 = vld [vmem:[#allocation4 + $0x1e] sm:$0xff]  ;;  %686 = vst.msk [vmem:[#allocation4 + $0x40] sm:$0xff] %vm677_vm2, %v3513_v11  ;;  %687 = vst.msk [vmem:[#allocation3] sm:$0xff] %vm677_vm2, %v3513_v11  ;;  %v3521_v17 = vpop.f32.mrb[7].mxu0  ;;  %v704_v23 = vmul.f32 %v3488_v2, %v691_v15 }
 0x23b   : > { %v775_v14 = vld [vmem:[#allocation4 + $0x8] sm:$0xff]  ;;  %v733_v24 = vmul.f32 %v3493_v3, %v720_v16  ;;  %684 = vst.msk [vmem:[#allocation4 + $0x30] sm:$0xff] %vm677_vm2, %v3521_v17  ;;  %v759_v28 = vmul.f32 %v3500_v5, %v746_v10  ;;  %v776_v21 = vld [vmem:[#allocation4 + $0x10] sm:$0xff]  ;;  %v749_v38 = vld [vmem:[#allocation4 + $0x1f] sm:$0xff] }
 0x23c   : > { %v689_v18 = vld [vmem:[#allocation4 + $0xd] sm:$0xff]  ;;  %v738_v27 = vadd.f32 %v730_v13, %v701_v12  ;;  %v690_v31 = vld [vmem:[#allocation4 + $0x15] sm:$0xff]  ;;  %v788_v33 = vmul.f32 %v3505_v6, %v775_v14  ;;  %v778_v41 = vld [vmem:[#allocation4 + $0x20] sm:$0xff]  ;;  %v762_v22 = vmul.f32 %v3500_v5, %v749_v38  ;;  %v789_v45 = vmul.f32 %v3505_v6, %v776_v21 }
 0x23d   : > { %v718_v19 = vld [vmem:[#allocation4 + $0xe] sm:$0xff]  ;;  %v702_v25 = vmul.f32 %v3488_v2, %v689_v18  ;;  %v719_v32 = vld [vmem:[#allocation4 + $0x16] sm:$0xff]  ;;  %v703_v34 = vmul.f32 %v3488_v2, %v690_v31  ;;  %v741_v36 = vadd.f32 %v733_v24, %v704_v23  ;;  %v791_v39 = vmul.f32 %v3505_v6, %v778_v41 }
 0x23e   : > { %v747_v20 = vld [vmem:[#allocation4 + $0xf] sm:$0xff]  ;;  %v731_v26 = vmul.f32 %v3493_v3, %v718_v19  ;;  %v732_v35 = vmul.f32 %v3493_v3, %v719_v32  ;;  %v748_v37 = vld [vmem:[#allocation4 + $0x17] sm:$0xff]  ;;  %v767_v43 = vadd.f32 %v759_v28, %v738_v27 }
 0x23f   : > { %v760_v42 = vmul.f32 %v3500_v5, %v747_v20  ;;  %v761_v48 = vmul.f32 %v3500_v5, %v748_v37  ;;  %v770_v52 = vadd.f32 %v762_v22, %v741_v36 }
 0x240   : > { %v739_v29 = vadd.f32 %v731_v26, %v702_v25  ;;  %v740_v47 = vadd.f32 %v732_v35, %v703_v34  ;;  %v796_v51 = vadd.f32 %v788_v33, %v767_v43  ;;  %v692_v55 = vld [vmem:[#allocation4 + $0x25] sm:$0xff] }
 0x241   : > { %v721_v56 = vld [vmem:[#allocation4 + $0x26] sm:$0xff]  ;;  %v799_v49 = vadd.f32 %v791_v39, %v770_v52  ;;  %v705_v50 = vmul.f32 %v3488_v2, %v692_v55  ;;  %v695_v27 = vld [vmem:[#allocation4 + $0x3d] sm:$0xff] }
 0x242   : > { %v768_v30 = vadd.f32 %v760_v42, %v739_v29  ;;  %v769_v53 = vadd.f32 %v761_v48, %v740_v47  ;;  %v750_v40 = vld [vmem:[#allocation4 + $0x27] sm:$0xff]  ;;  %v3545_v58 = vadd.f32 %v3539_v46, %v796_v51  ;;  %v734_v9 = vmul.f32 %v3493_v3, %v721_v56  ;;  %v751_v10 = vld [vmem:[#allocation4 + $0x2f] sm:$0xff]  ;;  %v724_v21 = vld [vmem:[#allocation4 + $0x3e] sm:$0xff] }
 0x243   : > { %v779_v59 = vld [vmem:[#allocation4 + $0x28] sm:$0xff]  ;;  %v763_v12 = vmul.f32 %v3500_v5, %v750_v40  ;;  %v3556_v16 = vadd.f32 %v3539_v46, %v799_v49  ;;  %v780_v19 = vld [vmem:[#allocation4 + $0x30] sm:$0xff]  ;;  %v764_v26 = vmul.f32 %v3500_v5, %v751_v10  ;;  %v753_v41 = vld [vmem:[#allocation4 + $0x3f] sm:$0xff]  ;;  %v708_v29 = vmul.f32 %v3488_v2, %v695_v27 }
 0x244   : > { %v797_v57 = vadd.f32 %v789_v45, %v768_v30  ;;  %v798_v60 = vadd.f32 %v790_v54, %v769_v53  ;;  %v693_v61 = vld [vmem:[#allocation4 + $0x2d] sm:$0xff]  ;;  %v792_v13 = vmul.f32 %v3505_v6, %v779_v59  ;;  %v2675_v15 = vmul.f32 -1.442695, %v3545_v58  ;;  %v694_v20 = vld [vmem:[#allocation4 + $0x35] sm:$0xff]  ;;  %v782_v48 = vld [vmem:[#allocation4 + $0x40] sm:$0xff] }
 0x245   : > { %v722_v8 = vld [vmem:[#allocation4 + $0x2e] sm:$0xff]  ;;  %v706_v18 = vmul.f32 %v3488_v2, %v693_v61  ;;  %v742_v25 = vadd.f32 %v734_v9, %v705_v50  ;;  %v723_v28 = vld [vmem:[#allocation4 + $0x36] sm:$0xff]  ;;  %v2678_v32 = vmul.f32 -1.442695, %v3556_v16  ;;  %v793_v33 = vmul.f32 %v3505_v6, %v780_v19 }
 0x246   : > { %v3552_v14 = vadd.f32 %v3539_v46, %v797_v57  ;;  %v3560_v23 = vadd.f32 %v3539_v46, %v798_v60  ;;  %v735_v24 = vmul.f32 %v3493_v3, %v722_v8  ;;  %3084 = vpow2.f32 %v2675_v15  ;;  %v752_v34 = vld [vmem:[#allocation4 + $0x37] sm:$0xff] }
 0x247   : > { %v771_v37 = vadd.f32 %v763_v12, %v742_v25  ;;  %v707_v38 = vmul.f32 %v3488_v2, %v694_v20  ;;  %v736_v42 = vmul.f32 %v3493_v3, %v723_v28  ;;  %v737_v43 = vmul.f32 %v3493_v3, %v724_v21  ;;  %v781_v47 = vld [vmem:[#allocation4 + $0x38] sm:$0xff] }
 0x248   : > { %v2676_v31 = vmul.f32 -1.442695, %v3552_v14  ;;  %v2677_v35 = vmul.f32 -1.442695, %v3560_v23  ;;  %v743_v36 = vadd.f32 %v735_v24, %v706_v18  ;;  %v765_v45 = vmul.f32 %v3500_v5, %v752_v34 }
 0x249   : > { %v800_v44 = vadd.f32 %v792_v13, %v771_v37  ;;  %v744_v30 = vadd.f32 %v736_v42, %v707_v38  ;;  %v745_v51 = vadd.f32 %v737_v43, %v708_v29  ;;  %v766_v52 = vmul.f32 %v3500_v5, %v753_v41 }
 0x24a   : > { %3086 = vpow2.f32 %v2676_v31  ;;  %v772_v22 = vadd.f32 %v764_v26, %v743_v36  ;;  %v794_v55 = vmul.f32 %v3505_v6, %v781_v47  ;;  %v795_v3 = vmul.f32 %v3505_v6, %v782_v48  ;;  %v3615_v47 = vld [vmem:[%s4080_s7] ss:$0 sm:$0xff] }
 0x24b   : > { %3088 = vpow2.f32 %v2677_v35  ;;  %v815_v53 = vadd.f32 %v3539_v46, %v800_v44  ;;  %v773_v2 = vadd.f32 %v765_v45, %v744_v30  ;;  %v774_v54 = vadd.f32 %v766_v52, %v745_v51 }
 0x24c   : > { %3090 = vpow2.f32 %v2678_v32  ;;  %v801_v39 = vadd.f32 %v793_v33, %v772_v22 }
 0x24d   : > { %v2679_v40 = vmul.f32 -1.442695, %v815_v53  ;;  %v802_v57 = vadd.f32 %v794_v55, %v773_v2  ;;  %v803_v49 = vadd.f32 %v795_v3, %v774_v54 }
 0x24e   : > { %v816_v56 = vadd.f32 %v3539_v46, %v801_v39 }
 0x24f   : > { %3092 = vpow2.f32 %v2679_v40  ;;  %v817_v60 = vadd.f32 %v3539_v46, %v802_v57  ;;  %v818_v5 = vadd.f32 %v3539_v46, %v803_v49 }
 0x250   : > { %v2680_v50 = vmul.f32 -1.442695, %v816_v56  ;;  %v3085_v59 = vpop.eup %3084 }
 0x251   : > { %v843_v61 = vadd.f32 1.0, %v3085_v59  ;;  %v2681_v9 = vmul.f32 -1.442695, %v817_v60  ;;  %v2682_v15 = vmul.f32 -1.442695, %v818_v5 }
 0x252   : > { %3094 = vpow2.f32 %v2680_v50 }
 0x253   : > { %3096 = vrcp.f32 %v843_v61 }
 0x254   : > { %v3087_v8 = vpop.eup %3086  ;;  %3098 = vpow2.f32 %v2681_v9 }
 0x255   : > { %v3089_v10 = vpop.eup %3088  ;;  %v844_v12 = vadd.f32 1.0, %v3087_v8 }
 0x256   : > { %v3091_v6 = vpop.eup %3090  ;;  %v845_v13 = vadd.f32 1.0, %v3089_v10 }
 0x257   : > { %3100 = vrcp.f32 %v844_v12  ;;  %v846_v18 = vadd.f32 1.0, %v3091_v6 }
 0x258   : > { %3102 = vrcp.f32 %v845_v13 }
 0x259   : > { %3104 = vrcp.f32 %v846_v18  ;;  %v3093_v19 = vpop.eup %3092 }
 0x25a   : > { %3106 = vpow2.f32 %v2682_v15  ;;  %v847_v20 = vadd.f32 1.0, %v3093_v19 }
 0x25c   : > { %v3095_v24 = vpop.eup %3094  ;;  %3108 = vrcp.f32 %v847_v20 }
 0x25d   : > { %v848_v46 = vadd.f32 1.0, %v3095_v24  ;;  %v3097_v25 = vpop.eup %3096 }
 0x25e   : > { %v3099_v26 = vpop.eup %3098  ;;  %v3581_v31 = vmul.f32 %v3097_v25, %v3545_v58 }
 0x25f   : > { %3110 = vrcp.f32 %v848_v46  ;;  %v849_v28 = vadd.f32 1.0, %v3099_v26 }
 0x261   : > { %v3101_v27 = vpop.eup %3100  ;;  %3112 = vrcp.f32 %v849_v28 }
 0x262   : > { %v3103_v21 = vpop.eup %3102  ;;  %v3584_v32 = vmul.f32 %v3101_v27, %v3552_v14 }
 0x263   : > { %v3105_v33 = vpop.eup %3104  ;;  %v3587_v34 = vmul.f32 %v3103_v21, %v3560_v23 }
 0x264   : > { %v3107_v35 = vpop.eup %3106  ;;  %v875_v36 = vpack.c.bf16 %v3584_v32, %v3581_v31  ;;  %v3592_v37 = vmul.f32 %v3105_v33, %v3556_v16 }
 0x265   : > { %v850_v38 = vadd.f32 1.0, %v3107_v35 }
 0x266   : > { %2880 = vmatprep.mubr.msk.bf16.mxu1 %vm677_vm2, %v875_v36  ;;  %v876_v58 = vpack.c.bf16 %v3592_v37, %v3587_v34  ;;  %v3109_v14 = vpop.eup %3108 }
 0x267   : > { %3114 = vrcp.f32 %v850_v38  ;;  %v3598_v41 = vmul.f32 %v3109_v14, %v815_v53  ;;  %v3676_v38 = vld [vmem:[%s4081_s8] sm:$0xff] }
 0x268   : > { %2881 = vmatmul.mubr.msk.bf16.vlgmr.msra.gmra.mrb[0].mxu1 %vm677_vm2, %v876_v58  ;;  %v3681_v58 = vld [vmem:[%s4081_s8 + $0x8] sm:$0xff] }
 0x269   : > { %v3111_v23 = vpop.eup %3110 }
 0x26a   : > { %v3600_v29 = vmul.f32 %v3111_v23, %v816_v56  ;;  %v3685_v23 = vld [vmem:[#allocation2] sm:$0xff]  }
 0x26b   : > { %v3113_v42 = vpop.eup %3112 }
 0x26c   : > { %v877_v16 = vpack.c.bf16 %v3600_v29, %v3598_v41  ;;  %v3605_v43 = vmul.f32 %v3113_v42, %v817_v60  ;;  %v3687_v42 = vld [vmem:[#allocation2 + $0x8] sm:$0xff]  }
 0x26e   : > { %2884 = vmatprep.mubr.msk.bf16.mxu1 %vm677_vm2, %v877_v16 }
 0x271   : > { %v3115_v22 = vpop.eup %3114 }
 0x272   : > { %v3607_v44 = vmul.f32 %v3115_v22, %v818_v5 }
 0x274   : > { %v878_v45 = vpack.c.bf16 %v3607_v44, %v3605_v43 }
 0x276   : > { %2885 = vmatmul.mubr.msk.bf16.gmra.mrb[4].mxu1 %vm677_vm2, %v878_v45 }
 0x33b   : > { %v2882_v48 = vpop.f32.mrb[0].mxu1 }
 0x33c   : > { %v3618_v30 = vadd.f32 %v2882_v48, %v3615_v47  ;;  %v964_v51 = vpop.f32.mrb[1].mxu1 }
 0x33d   : > { %v3621_v52 = vadd.f32 %v3615_v47, %v964_v51  ;;  %v2883_v39 = vpop.f32.mrb[2].mxu1 }
 0x33e   : > { %v1021_v53 = vand.u32 2147483647, %v3618_v30  ;;  %v3625_v2 = vadd.f32 %v2883_v39, %v3615_v47  ;;  %1208 = vrot.lane.b32.xlu0 %v3618_v30, %s3281_s17  ;;  %1175 = vrot.lane.b32.xlu1 %v3618_v30, %s3282_s18  ;;  %v967_v54 = vpop.f32.mrb[3].mxu1  ;;  %vm1005_vm3 = vcmp.ne.f32.partialorder %v3618_v30, %v3618_v30 }
 0x33f   : > { %v1019_v55 = vand.u32 2147483647, %v3621_v52  ;;  %v3633_v3 = vadd.f32 %v3615_v47, %v967_v54  ;;  %v997_v54 = vmax.f32 %v3618_v30, 0.0  ;;  %vm1003_vm4 = vcmp.ne.f32.partialorder %v3621_v52, %v3621_v52 }
 0x340   : > { %v1029_v56 = vsub.f32 0.0, %v1021_v53  ;;  %v1022_v40 = vand.u32 2147483647, %v3625_v2  ;;  %vm1006_vm11 = vcmp.ne.f32.partialorder %v3625_v2, %v3625_v2 }
 0x341   : > { %v1027_v57 = vsub.f32 0.0, %v1019_v55  ;;  %v1020_v49 = vand.u32 2147483647, %v3633_v3  ;;  %vm1004_vm12 = vcmp.ne.f32.partialorder %v3633_v3, %v3633_v3 }
 0x342   : > { %v1039_v50 = vmul.f32 1.442695, %v1029_v56  ;;  %v1030_v59 = vsub.f32 0.0, %v1022_v40  ;;  %1177 = vrot.lane.b32.xlu1 %v3625_v2, %s3282_s18  ;;  %1171 = vrot.lane.b32.xlu0 %v3621_v52, %s3282_s18 }
 0x343   : > { %v1035_v60 = vmul.f32 1.442695, %v1027_v57  ;;  %v1028_v5 = vsub.f32 0.0, %v1020_v49  ;;  %v995_v49 = vmax.f32 %v3621_v52, 0.0 }
 0x344   : > { %3116 = vpow2.f32 %v1039_v50  ;;  %v1041_v61 = vmul.f32 1.442695, %v1030_v59  ;;  %v1238_v59 = vlaneseq }
 0x345   : > { %3118 = vpow2.f32 %v1035_v60  ;;  %v1037_v8 = vmul.f32 1.442695, %v1028_v5  ;;  %v998_v5 = vmax.f32 %v3625_v2, 0.0 }
 0x346   : > { %3120 = vpow2.f32 %v1041_v61  ;;  %1210 = vrot.lane.b32.xlu1 %v3625_v2, %s3281_s17  ;;  %1204 = vrot.lane.b32.xlu0 %v3621_v52, %s3281_s17 }
 0x347   : > { %3122 = vpow2.f32 %v1037_v8 }
 0x349   : > { %v2886_v9 = vpop.f32.mrb[4].mxu1 }
 0x34a   : > { %v3646_v10 = vadd.f32 %v2886_v9, %v3615_v47  ;;  %v980_v12 = vpop.f32.mrb[5].mxu1  ;;  %1173 = vrot.lane.b32.xlu1 %v3633_v3, %s3282_s18 }
 0x34b   : > { %v3651_v6 = vadd.f32 %v3615_v47, %v980_v12  ;;  %v2887_v13 = vpop.f32.mrb[6].mxu1  ;;  %v1239_v12 = vshrl.u32 %v1238_v59, 7 }
 0x34c   : > { %v1025_v15 = vand.u32 2147483647, %v3646_v10  ;;  %v983_v18 = vpop.f32.mrb[7].mxu1  ;;  %1183 = vrot.lane.b32.xlu0 %v3646_v10, %s3282_s18  ;;  %v3658_v20 = vadd.f32 %v2887_v13, %v3615_v47  ;;  %v1242_v13 = vand.u32 127, %v1238_v59  ;;  %vm1009_vm14 = vcmp.ne.f32.partialorder %v3646_v10, %v3646_v10 }
 0x34d   : > { %v1023_v19 = vand.u32 2147483647, %v3651_v6  ;;  %v3692_v48 = vadd.f32 %v3615_v47, %v983_v18 }
 0x34e   : > { %v3117_v24 = vpop.eup %3116  ;;  %v1033_v46 = vsub.f32 0.0, %v1025_v15  ;;  %1206 = vrot.lane.b32.xlu1 %v3633_v3, %s3281_s17  ;;  %v1026_v36 = vand.u32 2147483647, %v3658_v20  ;;  %vm3722_vm7 = vcmp.eq.s32.totalorder %v1239_v12, %v1242_v13 }
 0x34f   : > { %v3662_v25 = vpop.eup %3118  ;;  %v1069_v26 = vadd.f32 1.0, %v3117_v24  ;;  %v1031_v35 = vsub.f32 0.0, %v1023_v19  ;;  %v1072_v16 = vmul.f32 -0.5, %v3117_v24  ;;  %v1075_v55 = vand.u32 2147483647, %v3117_v24 }
 0x350   : > { %v3664_v27 = vpop.eup %3120  ;;  %v1051_v28 = vadd.f32 1.0, %v3662_v25  ;;  %1179 = vrot.lane.b32.xlu0 %v3651_v6, %s3282_s18  ;;  %v1047_v14 = vmul.f32 1.442695, %v1033_v46  ;;  %v1054_v45 = vmul.f32 -0.5, %v3662_v25  ;;  %v1034_v53 = vsub.f32 0.0, %v1026_v36 }
 0x351   : > { %v3669_v21 = vpop.eup %3122  ;;  %3124 = vlog2.f32 %v1069_v26  ;;  %v1078_v33 = vadd.f32 1.0, %v3664_v27  ;;  %v1081_v51 = vmul.f32 -0.5, %v3664_v27  ;;  %v1043_v39 = vmul.f32 1.442695, %v1031_v35 }
 0x352   : > { %3126 = vlog2.f32 %v1051_v28  ;;  %1185 = vrot.lane.b32.xlu1 %v3658_v20, %s3282_s18  ;;  %v1060_v22 = vadd.f32 1.0, %v3669_v21  ;;  %v1057_v56 = vand.u32 2147483647, %v3662_v25  ;;  %v1073_v40 = vadd.f32 1.0, %v1072_v16 }
 0x353   : > { %3128 = vlog2.f32 %v1078_v33  ;;  %v1063_v47 = vmul.f32 -0.5, %v3669_v21  ;;  %v1049_v57 = vmul.f32 1.442695, %v1034_v53  ;;  %v1024_v50 = vand.u32 2147483647, %v3692_v48 }
 0x354   : > { %1212 = vrot.lane.b32.xlu0 %v3651_v6, %s3281_s17  ;;  %3130 = vlog2.f32 %v1060_v22  ;;  %v1055_v60 = vadd.f32 1.0, %v1054_v45  ;;  %v1082_v61 = vadd.f32 1.0, %v1081_v51  ;;  %vm3711_vm5 = vcmp.lt.f32.partialorder %v1075_v55, 0.0004427343 }
 0x355   : > { %3132 = vpow2.f32 %v1047_v14  ;;  %v1032_v9 = vsub.f32 0.0, %v1024_v50  ;;  %v1074_v18 = vmul.f32 %v3117_v24, %v1073_v40  ;;  %vm3717_vm6 = vcmp.lt.f32.partialorder %v1057_v56, 0.0004427343 }
 0x356   : > { %1181 = vrot.lane.b32.xlu1 %v3692_v48, %s3282_s18  ;;  %3134 = vpow2.f32 %v1043_v39  ;;  %v1084_v46 = vand.u32 2147483647, %v3664_v27  ;;  %v1064_v26 = vadd.f32 1.0, %v1063_v47  ;;  %v1240_v36 = vadd.s32 8, %v1239_v12 }
 0x357   : > { %3136 = vpow2.f32 %v1049_v57  ;;  %v1045_v35 = vmul.f32 1.442695, %v1032_v9  ;;  %v1056_v45 = vmul.f32 %v3662_v25, %v1055_v60  ;;  %v1083_v24 = vmul.f32 %v3664_v27, %v1082_v61 }
 0x358   : > { %1216 = vrot.lane.b32.xlu0 %v3646_v10, %s3281_s17  ;;  %v1066_v51 = vand.u32 2147483647, %v3669_v21  ;;  %vm3733_vm8 = vcmp.eq.s32.totalorder %v1240_v36, %v1242_v13  ;;  %vm1085_vm9 = vcmp.lt.f32.partialorder %v1084_v46, 0.0004427343  ;;  %v996_v27 = vmax.f32 %v3633_v3, 0.0 }
 0x359   : > { %3138 = vpow2.f32 %v1045_v35  ;;  %v1065_v60 = vmul.f32 %v3669_v21, %v1064_v26 }
 0x35a   : > { %1214 = vrot.lane.b32.xlu1 %v3692_v48, %s3281_s17  ;;  %vm1067_vm10 = vcmp.lt.f32.partialorder %v1066_v51, 0.0004427343 }
 0x35b   : > { %v3125_v15 = vpop.eup %3124 }
 0x35c   : > { %v3127_v28 = vpop.eup %3126  ;;  %v1071_v33 = vmul.f32 0.6931472, %v3125_v15 }
 0x35d   : > { %v3129_v16 = vpop.eup %3128  ;;  %v1053_v22 = vmul.f32 0.6931472, %v3127_v28 }
 0x35e   : > { %v1077_v39 = vsel %vm3711_vm5, %v1074_v18, %v1071_v33  ;;  %v1080_v53 = vmul.f32 0.6931472, %v3129_v16  ;;  %1218 = vrot.lane.b32.xlu1 %v3658_v20, %s3281_s17  ;;  %v3131_v56 = vpop.eup %3130 }
 0x35f   : > { %v1125_v40 = vadd.f32 %v1077_v39, %v997_v54  ;;  %v1059_v25 = vsel %vm3717_vm6, %v1056_v45, %v1053_v22  ;;  %v3133_v47 = vpop.eup %3132  ;;  %v1062_v59 = vmul.f32 0.6931472, %v3131_v56  ;;  %vm1008_vm6 = vcmp.ne.f32.partialorder %v3692_v48, %v3692_v48 }
 0x360   : > { %v1123_v57 = vadd.f32 %v1059_v25, %v995_v49  ;;  %v1086_v50 = vsel %vm1085_vm9, %v1083_v24, %v1080_v53  ;;  %v3135_v61 = vpop.eup %3134  ;;  %v1105_v54 = vadd.f32 1.0, %v3133_v47  ;;  %v1108_v26 = vmul.f32 -0.5, %v3133_v47 }
 0x361   : > { %v1133_v8 = vsel %vm1005_vm3, %v3618_v30, %v1125_v40  ;;  %v1126_v9 = vadd.f32 %v1086_v50, %v998_v5  ;;  %v1068_v21 = vsel %vm1067_vm10, %v1065_v60, %v1062_v59  ;;  %v3137_v13 = vpop.eup %3136  ;;  %v1090_v33 = vmul.f32 -0.5, %v3135_v61 }
 0x362   : > { %1141 = vst.msk [vmem:[#allocation5 + $0x10] sm:$0xff] %vm677_vm2, %v1133_v8  ;;  %v1149_v12 = vmul.f32 %v1133_v8, %v3587_v34  ;;  %v1131_v49 = vsel %vm1003_vm4, %v3621_v52, %v1123_v57  ;;  %v1124_v15 = vadd.f32 %v1068_v21, %v996_v27  ;;  %3140 = vlog2.f32 %v1105_v54 }
 0x363   : > { %1139 = vst.msk [vmem:[#allocation5] sm:$0xff] %vm677_vm2, %v1131_v49  ;;  %v1147_v30 = vmul.f32 %v1131_v49, %v3581_v31  ;;  %v1134_v5 = vsel %vm1006_vm11, %v3625_v2, %v1126_v9  ;;  %v1087_v52 = vadd.f32 1.0, %v3135_v61  ;;  %v1114_v46 = vadd.f32 1.0, %v3137_v13  ;;  %v3139_v28 = vpop.eup %3138 }
 0x364   : > { %1157 = vst.msk [vmem:[#allocation6 + $0x10] sm:$0xff] %vm677_vm2, %v1149_v12  ;;  %1142 = vst.msk [vmem:[#allocation5 + $0x18] sm:$0xff] %vm677_vm2, %v1134_v5  ;;  %v1150_v18 = vmul.f32 %v1134_v5, %v3592_v37  ;;  %v1132_v19 = vsel %vm1004_vm12, %v3633_v3, %v1124_v15  ;;  %v1096_v35 = vadd.f32 1.0, %v3139_v28  ;;  %v1109_v36 = vadd.f32 1.0, %v1108_v26 }
 0x365   : > { %1155 = vst.msk [vmem:[#allocation6] sm:$0xff] %vm677_vm2, %v1147_v30  ;;  %1140 = vst.msk [vmem:[#allocation5 + $0x8] sm:$0xff] %vm677_vm2, %v1132_v19  ;;  %v1148_v2 = vmul.f32 %v1132_v19, %v3584_v32  ;;  %3142 = vlog2.f32 %v1087_v52  ;;  %v1117_v16 = vmul.f32 -0.5, %v3137_v13  ;;  %v1111_v22 = vand.u32 2147483647, %v3133_v47 }
 0x366   : > { %1158 = vst.msk [vmem:[#allocation6 + $0x18] sm:$0xff] %vm677_vm2, %v1150_v18  ;;  %3144 = vlog2.f32 %v1114_v46  ;;  %v1091_v45 = vadd.f32 1.0, %v1090_v33  ;;  %v1093_v24 = vand.u32 2147483647, %v3135_v61  ;;  %v1110_v39 = vmul.f32 %v3133_v47, %v1109_v36 }
 0x367   : > { %1156 = vst.msk [vmem:[#allocation6 + $0x8] sm:$0xff] %vm677_vm2, %v1148_v2  ;;  %3146 = vlog2.f32 %v1096_v35  ;;  %v1118_v53 = vadd.f32 1.0, %v1117_v16  ;;  %v1099_v56 = vmul.f32 -0.5, %v3139_v28  ;;  %v1001_v40 = vmax.f32 %v3646_v10, 0.0 }
 0x368   : > { %vm1112_vm13 = vcmp.lt.f32.partialorder %v1111_v22, 0.0004427343  ;;  %v1120_v25 = vand.u32 2147483647, %v3137_v13  ;;  %v999_v50 = vmax.f32 %v3651_v6, 0.0  ;;  %v1092_v9 = vmul.f32 %v3135_v61, %v1091_v45 }
 0x369   : > { %v1002_v54 = vmax.f32 %v3658_v20, 0.0  ;;  %vm1094_vm15 = vcmp.lt.f32.partialorder %v1093_v24, 0.0004427343  ;;  %v1119_v12 = vmul.f32 %v3137_v13, %v1118_v53  ;;  %v1100_v49 = vadd.f32 1.0, %v1099_v56 }
 0x36a   : > { %vm1121_vm0 = vcmp.lt.f32.partialorder %v1120_v25, 0.0004427343  ;;  %v1102_v5 = vand.u32 2147483647, %v3139_v28  ;;  %vm1007_vm3 = vcmp.ne.f32.partialorder %v3651_v6, %v3651_v6  ;;  %vm1010_vm4 = vcmp.ne.f32.partialorder %v3658_v20, %v3658_v20 }
 0x36b   : > { %v1101_v46 = vmul.f32 %v3139_v28, %v1100_v49  ;;  %v1000_v33 = vmax.f32 %v3692_v48, 0.0  ;;  %vm1195_vm9 = vcmask 130048  }
 0x36c   : > { %v3141_v3 = vpop.eup %3140  ;;  %vm1103_vm5 = vcmp.lt.f32.partialorder %v1102_v5, 0.0004427343 }
 0x36d   : > { %v1107_v51 = vmul.f32 0.6931472, %v3141_v3 }
 0x36f   : > { %v3143_v27 = vpop.eup %3142  ;;  %v1113_v57 = vsel %vm1112_vm13, %v1110_v39, %v1107_v51 }
 0x370   : > { %v3145_v59 = vpop.eup %3144  ;;  %v1129_v60 = vadd.f32 %v1113_v57, %v1001_v40  ;;  %v1089_v8 = vmul.f32 0.6931472, %v3143_v27 }
 0x371   : > { %v1116_v47 = vmul.f32 0.6931472, %v3145_v59  ;;  %v3147_v19 = vpop.eup %3146 }
 0x372   : > { %v1137_v21 = vsel %vm1009_vm14, %v3646_v10, %v1129_v60  ;;  %v1095_v30 = vsel %vm1094_vm15, %v1092_v9, %v1089_v8  ;;  %v1098_v10 = vmul.f32 0.6931472, %v3147_v19 }
 0x373   : > { %1145 = vst.msk [vmem:[#allocation5 + $0x30] sm:$0xff] %vm677_vm2, %v1137_v21  ;;  %v1153_v15 = vmul.f32 %v1137_v21, %v3605_v43  ;;  %v1127_v18 = vadd.f32 %v1095_v30, %v999_v50  ;;  %v1122_v52 = vsel %vm1121_vm0, %v1119_v12, %v1116_v47 }
 0x374   : > { %v1130_v61 = vadd.f32 %v1122_v52, %v1002_v54  ;;  %v1104_v36 = vsel %vm1103_vm5, %v1101_v46, %v1098_v10 }
 0x375   : > { %1161 = vst.msk [vmem:[#allocation6 + $0x30] sm:$0xff] %vm677_vm2, %v1153_v15  ;;  %v1135_v13 = vsel %vm1007_vm3, %v3651_v6, %v1127_v18  ;;  %v1128_v6 = vadd.f32 %v1104_v36, %v1000_v33 }
 0x376   : > { %1143 = vst.msk [vmem:[#allocation5 + $0x20] sm:$0xff] %vm677_vm2, %v1135_v13  ;;  %v1151_v2 = vmul.f32 %v1135_v13, %v3598_v41  ;;  %v1138_v26 = vsel %vm1010_vm4, %v3658_v20, %v1130_v61 }
 0x377   : > { %1146 = vst.msk [vmem:[#allocation5 + $0x38] sm:$0xff] %vm677_vm2, %v1138_v26  ;;  %v1154_v35 = vmul.f32 %v1138_v26, %v3607_v44  ;;  %v1136_v28 = vsel %vm1008_vm6, %v3692_v48, %v1128_v6 }
 0x378   : > { %1159 = vst.msk [vmem:[#allocation6 + $0x20] sm:$0xff] %vm677_vm2, %v1151_v2  ;;  %1144 = vst.msk [vmem:[#allocation5 + $0x28] sm:$0xff] %vm677_vm2, %v1136_v28  ;;  %v1152_v20 = vmul.f32 %v1136_v28, %v3600_v29 }
 0x379   : > { %1162 = vst.msk [vmem:[#allocation6 + $0x38] sm:$0xff] %vm677_vm2, %v1154_v35 }
 0x37a   : > { %1160 = vst.msk [vmem:[#allocation6 + $0x28] sm:$0xff] %vm677_vm2, %v1152_v20 }
 0x3b0   : > { %v1176_v16 = vpop.permute.xlu1 %1175  ;;  %v1209_v22 = vpop.permute.xlu0 %1208 }
 0x3b1   : > { %1198 = vst.msk [vmem:[#allocation7 + $0x10] sm:$0xff] %vm1195_vm9, %v1176_v16  ;;  %1230 = vst.msk [vmem:[#allocation8 + $0x10] sm:$0xff] %vm1195_vm9, %v1209_v22 }
 0x3b4   : > { %v1178_v3 = vpop.permute.xlu1 %1177  ;;  %v1172_v45 = vpop.permute.xlu0 %1171 }
 0x3b5   : > { %1199 = vst.msk [vmem:[#allocation7 + $0x18] sm:$0xff] %vm1195_vm9, %v1178_v3  ;;  %1196 = vst.msk [vmem:[#allocation7] sm:$0xff] %vm1195_vm9, %v1172_v45 }
 0x3b8   : > { %v1211_v48 = vpop.permute.xlu1 %1210  ;;  %v1205_v24 = vpop.permute.xlu0 %1204 }
 0x3b9   : > { %1231 = vst.msk [vmem:[#allocation8 + $0x18] sm:$0xff] %vm1195_vm9, %v1211_v48  ;;  %1228 = vst.msk [vmem:[#allocation8] sm:$0xff] %vm1195_vm9, %v1205_v24 }
 0x3bc   : > { %v1174_v51 = vpop.permute.xlu1 %1173 }
 0x3bd   : > { %1197 = vst.msk [vmem:[#allocation7 + $0x8] sm:$0xff] %vm1195_vm9, %v1174_v51 }
 0x3be   : > { %v1184_v39 = vpop.permute.xlu0 %1183 }
 0x3bf   : > { %1202 = vst.msk [vmem:[#allocation7 + $0x30] sm:$0xff] %vm1195_vm9, %v1184_v39 }
 0x3c0   : > { %v1207_v53 = vpop.permute.xlu1 %1206 }
 0x3c1   : > { %1229 = vst.msk [vmem:[#allocation8 + $0x8] sm:$0xff] %vm1195_vm9, %v1207_v53 }
 0x3c2   : > { %v1180_v56 = vpop.permute.xlu0 %1179 }
 0x3c3   : > { %1200 = vst.msk [vmem:[#allocation7 + $0x20] sm:$0xff] %vm1195_vm9, %v1180_v56 }
 0x3c4   : > { %v1186_v40 = vpop.permute.xlu1 %1185 }
 0x3c5   : > { %1203 = vst.msk [vmem:[#allocation7 + $0x38] sm:$0xff] %vm1195_vm9, %v1186_v40 }
 0x3c6   : > { %v1213_v25 = vpop.permute.xlu0 %1212 }
 0x3c7   : > { %1232 = vst.msk [vmem:[#allocation8 + $0x20] sm:$0xff] %vm1195_vm9, %v1213_v25 }
 0x3c8   : > { %v1182_v27 = vpop.permute.xlu1 %1181 }
 0x3c9   : > { %1201 = vst.msk [vmem:[#allocation7 + $0x28] sm:$0xff] %vm1195_vm9, %v1182_v27 }
 0x3ca   : > { %v1217_v57 = vpop.permute.xlu0 %1216 }
 0x3cb   : > { %1234 = vst.msk [vmem:[#allocation8 + $0x30] sm:$0xff] %vm1195_vm9, %v1217_v57 }
 0x3cc   : > { %v1215_v50 = vpop.permute.xlu1 %1214 }
 0x3cd   : > { %1233 = vst.msk [vmem:[#allocation8 + $0x28] sm:$0xff] %vm1195_vm9, %v1215_v50 }
 0x3d0   : > { %v1219_v59 = vpop.permute.xlu1 %1218 }
 0x3d1   : > { %1235 = vst.msk [vmem:[#allocation8 + $0x38] sm:$0xff] %vm1195_vm9, %v1219_v59 }
 0x3d2 LB: >> { %s3829_s29 = sshll.u32 %s3278_s28, 3  ;;  %v3283_v27 = vmov 0.0|0.0   ;;  %vm3284_vm10 = vmmov 0   ;;  %v3285_v59 = vmov 0.0   ;;  %vm1370_vm11 = vcmask 516096   ;;  %s1252_s28 = sadd.s32 1, %s3278_s28   ;;  %s3278_s28 = sphi %s3817_s28, %s1252_s28   ;;  %v3274_v23 = vphi %v3685_v23, %v4094_v23   ;;  %v3270_v42 = vphi %v3687_v42, %v4093_v42  }
 0x3d3   : >> { %s3832_s30 = scalar_lea.vmem [#allocation7], %s3829_s29  ;;  %2960 = vmatprep.subr.bf16.mxu0 %v3283_v27  ;;  %2963 = vmatprep.subr.bf16.mxu1 %v3283_v27  ;;  %s3897_s12 = scalar_lea.vmem [#allocation5], %s3829_s29 }
 0x3d4   : >> { %v2694_v60 = vld [vmem:[%s3832_s30] ss:$0 sm:$0xff]  ;;  %v2706_v8 = vld [vmem:[%s3832_s30 + $0x1] ss:$0 sm:$0xff]  ;;  %v2720_v30 = vld [vmem:[%s3832_s30 + $0x2] ss:$0 sm:$0xff]  ;;  %2892 = vmatprep.mubr.msk.f32.mxu0 %vm3284_vm10, %v3285_v59  ;;  %2899 = vmatprep.mubr.msk.f32.mxu1 %vm3284_vm10, %v3285_v59 }
 0x3d5   : >> { %v1278_v9 = vsel %vm3722_vm7, %v2694_v60, 0.0  ;;  %v1395_v54 = vsel %vm3722_vm7, %v2706_v8, 0.0  ;;  %v1279_v47 = vsel %vm3733_vm8, %v2694_v60, 0.0  ;;  %v1396_v12 = vsel %vm3733_vm8, %v2706_v8, 0.0  ;;  %v2734_v19 = vld [vmem:[%s3832_s30 + $0x3] ss:$0 sm:$0xff] }
 0x3d6   : >> { %v1280_v49 = vsel %vm1195_vm9, %v1278_v9, 0.0  ;;  %v1397_v21 = vsel %vm1195_vm9, %v1395_v54, 0.0  ;;  %v1283_v5 = vsel %vm1195_vm9, %v1279_v47, 0.0  ;;  %v1400_v15 = vsel %vm1195_vm9, %v1396_v12, 0.0  ;;  %v2748_v2 = vld [vmem:[%s3832_s30 + $0x4] ss:$0 sm:$0xff] }
 0x3d7   : >> { %1281 = vadd.xlane.f32.xlu0 %v1280_v49  ;;  %1398 = vadd.xlane.f32.xlu1 %v1397_v21  ;;  %v1511_v18 = vsel %vm3722_vm7, %v2720_v30, 0.0  ;;  %v1512_v52 = vsel %vm3733_vm8, %v2720_v30, 0.0  ;;  %v1627_v10 = vsel %vm3722_vm7, %v2734_v19, 0.0  ;;  %v1628_v46 = vsel %vm3733_vm8, %v2734_v19, 0.0  ;;  %v2762_v6 = vld [vmem:[%s3832_s30 + $0x5] ss:$0 sm:$0xff] }
 0x3d8   : >> { %v1513_v61 = vsel %vm1195_vm9, %v1511_v18, 0.0  ;;  %v1516_v13 = vsel %vm1195_vm9, %v1512_v52, 0.0  ;;  %v1629_v26 = vsel %vm1195_vm9, %v1627_v10, 0.0  ;;  %v1632_v33 = vsel %vm1195_vm9, %v1628_v46, 0.0  ;;  %v2776_v3 = vld [vmem:[%s3832_s30 + $0x6] ss:$0 sm:$0xff] }
 0x3d9   : >> { %v1743_v35 = vsel %vm3722_vm7, %v2748_v2, 0.0  ;;  %v1744_v36 = vsel %vm3733_vm8, %v2748_v2, 0.0  ;;  %v1859_v16 = vsel %vm3722_vm7, %v2762_v6, 0.0  ;;  %v1860_v22 = vsel %vm3733_vm8, %v2762_v6, 0.0  ;;  %v2790_v39 = vld [vmem:[%s3832_s30 + $0x7] ss:$0 sm:$0xff] }
 0x3da   : >> { %v1745_v28 = vsel %vm1195_vm9, %v1743_v35, 0.0  ;;  %v1748_v20 = vsel %vm1195_vm9, %v1744_v36, 0.0  ;;  %v1861_v45 = vsel %vm1195_vm9, %v1859_v16, 0.0  ;;  %v1864_v48 = vsel %vm1195_vm9, %v1860_v22, 0.0  ;;  %v2693_v60 = vld [vmem:[%s3897_s12] ss:$0 sm:$0xff] }
 0x3db   : >> { %1284 = vadd.xlane.f32.xlu0 %v1283_v5  ;;  %1401 = vadd.xlane.f32.xlu1 %v1400_v15  ;;  %v1975_v24 = vsel %vm3722_vm7, %v2776_v3, 0.0  ;;  %v1976_v51 = vsel %vm3733_vm8, %v2776_v3, 0.0  ;;  %v2091_v40 = vsel %vm3722_vm7, %v2790_v39, 0.0  ;;  %v2092_v25 = vsel %vm3733_vm8, %v2790_v39, 0.0  ;;  %v2705_v9 = vld [vmem:[%s3897_s12 + $0x1] ss:$0 sm:$0xff] }
 0x3dc   : >> { %v1977_v53 = vsel %vm1195_vm9, %v1975_v24, 0.0  ;;  %v1980_v56 = vsel %vm1195_vm9, %v1976_v51, 0.0  ;;  %v2093_v57 = vsel %vm1195_vm9, %v2091_v40, 0.0  ;;  %v2096_v50 = vsel %vm1195_vm9, %v2092_v25, 0.0  ;;  %v2719_v49 = vld [vmem:[%s3897_s12 + $0x2] ss:$0 sm:$0xff] }
 0x3dd   : >> { %v1268_v8 = vmul.f32 %v2693_v60, %v3676_v38  ;;  %v1269_v47 = vmul.f32 %v2693_v60, %v3681_v58  ;;  %v1385_v12 = vmul.f32 %v2705_v9, %v3676_v38  ;;  %v1386_v30 = vmul.f32 %v2705_v9, %v3681_v58  ;;  %v2733_v18 = vld [vmem:[%s3897_s12 + $0x3] ss:$0 sm:$0xff]  ;;  %v2747_v10 = vld [vmem:[%s3897_s12 + $0x4] ss:$0 sm:$0xff]  ;;  %v2761_v36 = vld [vmem:[%s3897_s12 + $0x5] ss:$0 sm:$0xff] }
 0x3de   : >> { %v1501_v15 = vmul.f32 %v2719_v49, %v3676_v38  ;;  %v1502_v19 = vmul.f32 %v2719_v49, %v3681_v58  ;;  %v1618_v46 = vmul.f32 %v2733_v18, %v3681_v58  ;;  %v1733_v35 = vmul.f32 %v2747_v10, %v3676_v38  ;;  %s3915_s13 = scalar_lea.vmem [#allocation6], %s3829_s29  ;;  %s3932_s15 = scalar_lea.vmem [#allocation8], %s3829_s29 }
 0x3df   : >> { %1514 = vadd.xlane.f32.xlu0 %v1513_v61  ;;  %1517 = vadd.xlane.f32.xlu1 %v1516_v13  ;;  %v1270_v54 = vmul.f32 1.442695, %v1268_v8  ;;  %v1272_v21 = vmul.f32 1.442695, %v1269_v47  ;;  %v1387_v5 = vmul.f32 1.442695, %v1385_v12  ;;  %v1617_v13 = vmul.f32 %v2733_v18, %v3676_v38 }
 0x3e0   : >> { %v1389_v52 = vmul.f32 1.442695, %v1386_v30  ;;  %v1503_v61 = vmul.f32 1.442695, %v1501_v15  ;;  %v1505_v2 = vmul.f32 1.442695, %v1502_v19  ;;  %v1849_v51 = vmul.f32 %v2761_v36, %v3676_v38 }
 0x3e1   : >> { %3148 = vpow2.f32 %v1270_v54  ;;  %v2695_v6 = vld [vmem:[%s3915_s13] ss:$0 sm:$0xff]  ;;  %v1735_v24 = vmul.f32 1.442695, %v1733_v35  ;;  %v2721_v30 = vld [vmem:[%s3915_s13 + $0x2] ss:$0 sm:$0xff] }
 0x3e2   : >> { %3150 = vpow2.f32 %v1272_v21  ;;  %v1851_v9 = vmul.f32 1.442695, %v1849_v51  ;;  %s1369_s16 = scalar_lea.vmem [#allocation9], %s3829_s29  ;;  %p1249_p8 = scmp.ge.s32.totalorder %s1252_s28, 8  }
 0x3e3   : >> { %1630 = vadd.xlane.f32.xlu0 %v1629_v26  ;;  %1633 = vadd.xlane.f32.xlu1 %v1632_v33  ;;  %3152 = vpow2.f32 %v1387_v5  ;;  %v1619_v33 = vmul.f32 1.442695, %v1617_v13 }
 0x3e4   : >> { %3154 = vpow2.f32 %v1389_v52  ;;  %v2789_v52 = vld [vmem:[%s3897_s12 + $0x7] ss:$0 sm:$0xff] }
 0x3e5   : >> { %3156 = vpow2.f32 %v1503_v61 }
 0x3e6   : >> { %3158 = vpow2.f32 %v1505_v2 }
 0x3e7   : >> { %1746 = vadd.xlane.f32.xlu0 %v1745_v28  ;;  %1749 = vadd.xlane.f32.xlu1 %v1748_v20  ;;  %v1621_v28 = vmul.f32 1.442695, %v1618_v46  ;;  %v1734_v20 = vmul.f32 %v2747_v10, %v3681_v58  ;;  %3160 = vpow2.f32 %v1619_v33 }
 0x3e9   : >> { %3162 = vpow2.f32 %v1621_v28  ;;  %v1737_v40 = vmul.f32 1.442695, %v1734_v20  ;;  %v2081_v28 = vmul.f32 %v2789_v52, %v3676_v38 }
 0x3ea   : >> { %3164 = vpow2.f32 %v1735_v24 }
 0x3eb   : >> { %1862 = vadd.xlane.f32.xlu0 %v1861_v45  ;;  %1865 = vadd.xlane.f32.xlu1 %v1864_v48  ;;  %v3149_v26 = vpop.eup %3148  ;;  %v2707_v48 = vld [vmem:[%s3915_s13 + $0x1] ss:$0 sm:$0xff]  ;;  %3166 = vpow2.f32 %v1737_v40 }
 0x3ec   : >> { %v1292_v16 = vmul.f32 %v3274_v23, %v3149_v26  ;;  %v3151_v22 = vpop.eup %3150  ;;  %v1850_v23 = vmul.f32 %v2761_v36, %v3681_v58  ;;  %3168 = vpow2.f32 %v1851_v9 }
 0x3ef   : >> { %1978 = vadd.xlane.f32.xlu0 %v1977_v53  ;;  %1981 = vadd.xlane.f32.xlu1 %v1980_v56  ;;  %v2775_v53 = vld [vmem:[%s3897_s12 + $0x6] ss:$0 sm:$0xff]  ;;  %v3153_v56 = vpop.eup %3152 }
 0x3f0   : >> { %v1965_v54 = vmul.f32 %v2775_v53, %v3676_v38  ;;  %v3155_v47 = vpop.eup %3154  ;;  %v1966_v10 = vmul.f32 %v2775_v53, %v3681_v58  ;;  %v3180_v38 = vld [vmem:[%s4083_s10] sm:$0xff] (%p1249_p8)  }
 0x3f1   : >> { %v3157_v21 = vpop.eup %3156 }
 0x3f2   : >> { %v1967_v13 = vmul.f32 1.442695, %v1965_v54  ;;  %v3159_v46 = vpop.eup %3158  ;;  %v1969_v51 = vmul.f32 1.442695, %v1966_v10  ;;  %v2704_v54 = vld [vmem:[%s3932_s15 + $0x1] sm:$0x1] }
 0x3f3   : >> { %2094 = vadd.xlane.f32.xlu0 %v2093_v57  ;;  %2097 = vadd.xlane.f32.xlu1 %v2096_v50  ;;  %v1293_v50 = vmul.f32 %v3270_v42, %v3151_v22  ;;  %v1853_v42 = vmul.f32 1.442695, %v1850_v23  ;;  %v3161_v36 = vpop.eup %3160  ;;  %v2083_v23 = vmul.f32 1.442695, %v2081_v28  ;;  %v2718_v10 = vld [vmem:[%s3932_s15 + $0x2] sm:$0x1] }
 0x3f5   : >> { %3170 = vpow2.f32 %v1853_v42 }
 0x3f6   : >> { %3172 = vpow2.f32 %v1967_v13 }
 0x3f7   : >> { %3174 = vpow2.f32 %v1969_v51 }
 0x3f8   : >> { %3176 = vpow2.f32 %v2083_v23  ;;  %v2791_v23 = vld [vmem:[%s3915_s13 + $0x7] ss:$0 sm:$0xff] }
 0x464   : >> { %v1282_v3 = vpop.xlane.xlu0 %1281  ;;  %v1399_v45 = vpop.xlane.xlu1 %1398 }
 0x465   : >> { %v1290_v39 = vmul.f32 %v2695_v6, %v1282_v3  ;;  %v1407_v57 = vmul.f32 %v2707_v48, %v1399_v45  ;;  %v1263_v3 = vld [vmem:[%s3932_s15] sm:$0x1]  ;;  %v3163_v45 = vpop.eup %3162 }
 0x467   : >> { %v1294_v25 = vadd.f32 %v1292_v16, %v1290_v39  ;;  %v2082_v39 = vmul.f32 %v2789_v52, %v3681_v58  ;;  %v2763_v52 = vld [vmem:[%s3915_s13 + $0x5] ss:$0 sm:$0xff]  ;;  %v2802_v58 = vmul.f32 (%p1249_p8), -1.442695, %v3495_v4 }
 0x468   : >> { %v1285_v60 = vpop.xlane.xlu0 %1284  ;;  %v1402_v8 = vpop.xlane.xlu1 %1401 }
 0x469   : >> { %v1409_v12 = vmul.f32 %v3153_v56, %v1294_v25  ;;  %v1291_v49 = vmul.f32 %v2695_v6, %v1285_v60  ;;  %v1408_v18 = vmul.f32 %v2707_v48, %v1402_v8  ;;  %v2735_v6 = vld [vmem:[%s3915_s13 + $0x3] ss:$0 sm:$0xff] }
 0x46b   : >> { %v1411_v5 = vadd.f32 %v1409_v12, %v1407_v57  ;;  %v1295_v15 = vadd.f32 %v1293_v50, %v1291_v49  ;;  %v3165_v57 = vpop.eup %3164  ;;  %v2749_v50 = vld [vmem:[%s3915_s13 + $0x4] ss:$0 sm:$0xff] }
 0x46c   : >> { %v1515_v19 = vpop.xlane.xlu0 %1514  ;;  %v1518_v61 = vpop.xlane.xlu1 %1517 }
 0x46d   : >> { %v1410_v2 = vmul.f32 %v3155_v47, %v1295_v15  ;;  %v1523_v26 = vmul.f32 %v2721_v30, %v1515_v19  ;;  %v1525_v33 = vmul.f32 %v3157_v21, %v1411_v5  ;;  %v2961_v35 = vpack.c.bf16 %v1295_v15, %v1294_v25  ;;  %v3167_v47 = vpop.eup %3166 }
 0x46e   : >> { %v1524_v22 = vmul.f32 %v2721_v30, %v1518_v61  ;;  %v2085_v21 = vmul.f32 1.442695, %v2082_v39  ;;  %v3169_v42 = vpop.eup %3168 }
 0x46f   : >> { %v1412_v20 = vadd.f32 %v1410_v2, %v1408_v18  ;;  %v1527_v16 = vadd.f32 %v1525_v33, %v1523_v26  ;;  %2962 = vmatpush3.bf16.msra.mxu0 %v2961_v35  ;;  %v3171_v26 = vpop.eup %3170 }
 0x470   : >> { %v1631_v48 = vpop.xlane.xlu0 %1630  ;;  %v1634_v24 = vpop.xlane.xlu1 %1633  ;;  %2966 = vmatprep.subr.bf16.mxu0 %v3283_v27  ;;  %3178 = vpow2.f32 %v2085_v21 }
 0x471   : >> { %v1526_v53 = vmul.f32 %v3159_v46, %v1412_v20  ;;  %v1639_v56 = vmul.f32 %v2735_v6, %v1631_v48  ;;  %v1641_v40 = vmul.f32 %v3161_v36, %v1527_v16  ;;  %v2964_v25 = vpack.c.bf16 %v1412_v20, %v1411_v5  ;;  %v3173_v28 = vpop.eup %3172  ;;  %v2777_v20 = vld [vmem:[%s3915_s13 + $0x6] ss:$0 sm:$0xff] }
 0x472   : >> { %2893 = vmatmul.mubr.msk.f32.vlgmr.msra.gmra.mrb[0].mxu0 %vm1195_vm9, %v1263_v3  ;;  %v1640_v9 = vmul.f32 %v2735_v6, %v1634_v24 }
 0x473   : >> { %v1528_v60 = vadd.f32 %v1526_v53, %v1524_v22  ;;  %v1643_v8 = vadd.f32 %v1641_v40, %v1639_v56  ;;  %2965 = vmatpush3.bf16.msra.mxu1 %v2964_v25  ;;  %2906 = vmatprep.mubr.msk.f32.mxu0 %vm3284_vm10, %v3285_v59  ;;  %v3175_v40 = vpop.eup %3174 }
 0x474   : >> { %v1747_v12 = vpop.xlane.xlu0 %1746  ;;  %v1750_v49 = vpop.xlane.xlu1 %1749  ;;  %2969 = vmatprep.subr.bf16.mxu1 %v3283_v27 }
 0x475   : >> { %v2967_v30 = vpack.c.bf16 %v1528_v60, %v1527_v16  ;;  %v1642_v5 = vmul.f32 %v3163_v45, %v1528_v60  ;;  %v1755_v15 = vmul.f32 %v2749_v50, %v1747_v12  ;;  %v1757_v18 = vmul.f32 %v3165_v57, %v1643_v8  ;;  %v2732_v45 = vld [vmem:[%s3932_s15 + $0x3] sm:$0x1]  ;;  %v2746_v60 = vld [vmem:[%s3932_s15 + $0x4] sm:$0x1] }
 0x476   : >> { %2900 = vmatmul.mubr.msk.f32.vlgmr.msra.gmra.mrb[0].mxu1 %vm1195_vm9, %v2704_v54  ;;  %v1756_v13 = vmul.f32 %v2749_v50, %v1750_v49 }
 0x477   : >> { %v1644_v19 = vadd.f32 %v1642_v5, %v1640_v9  ;;  %v1759_v61 = vadd.f32 %v1757_v18, %v1755_v15  ;;  %2968 = vmatpush3.bf16.msra.mxu0 %v2967_v30  ;;  %2913 = vmatprep.mubr.msk.f32.mxu1 %vm3284_vm10, %v3285_v59  ;;  %v2760_v18 = vld [vmem:[%s3932_s15 + $0x5] sm:$0x1] }
 0x478   : >> { %v1863_v46 = vpop.xlane.xlu0 %1862  ;;  %v1866_v2 = vpop.xlane.xlu1 %1865  ;;  %2972 = vmatprep.subr.bf16.mxu0 %v3283_v27 }
 0x479   : >> { %v2970_v33 = vpack.c.bf16 %v1644_v19, %v1643_v8  ;;  %v1758_v35 = vmul.f32 %v3167_v47, %v1644_v19  ;;  %v1871_v36 = vmul.f32 %v2763_v52, %v1863_v46  ;;  %v1873_v6 = vmul.f32 %v3169_v42, %v1759_v61  ;;  %v3177_v8 = vpop.eup %3176  ;;  %v2788_v46 = vld [vmem:[%s3932_s15 + $0x7] sm:$0x1] }
 0x47a   : >> { %2907 = vmatmul.mubr.msk.f32.vlgmr.msra.gmra.mrb[2].mxu0 %vm1195_vm9, %v2718_v10  ;;  %v1872_v3 = vmul.f32 %v2763_v52, %v1866_v2  ;;  %v3179_v49 = vpop.eup %3178 }
 0x47b   : >> { %v1760_v16 = vadd.f32 %v1758_v35, %v1756_v13  ;;  %v1875_v22 = vadd.f32 %v1873_v6, %v1871_v36  ;;  %2971 = vmatpush3.bf16.msra.mxu1 %v2970_v33  ;;  %2920 = vmatprep.mubr.msk.f32.mxu0 %vm3284_vm10, %v3285_v59  ;;  %v2774_v13 = vld [vmem:[%s3932_s15 + $0x6] sm:$0x1] }
 0x47c   : >> { %v1979_v48 = vpop.xlane.xlu0 %1978  ;;  %v1982_v24 = vpop.xlane.xlu1 %1981  ;;  %2975 = vmatprep.subr.bf16.mxu1 %v3283_v27 }
 0x47d   : >> { %v2973_v51 = vpack.c.bf16 %v1760_v16, %v1759_v61  ;;  %v1874_v39 = vmul.f32 %v3171_v26, %v1760_v16  ;;  %v1987_v53 = vmul.f32 %v2777_v20, %v1979_v48  ;;  %v1989_v56 = vmul.f32 %v3173_v28, %v1875_v22 }
 0x47e   : >> { %2914 = vmatmul.mubr.msk.f32.vlgmr.msra.gmra.mrb[2].mxu1 %vm1195_vm9, %v2732_v45  ;;  %v1988_v50 = vmul.f32 %v2777_v20, %v1982_v24 }
 0x47f   : >> { %v1876_v25 = vadd.f32 %v1874_v39, %v1872_v3  ;;  %v1991_v57 = vadd.f32 %v1989_v56, %v1987_v53  ;;  %2974 = vmatpush3.bf16.msra.mxu0 %v2973_v51  ;;  %2927 = vmatprep.mubr.msk.f32.mxu1 %vm3284_vm10, %v3285_v59  ;;  %v2800_v51 = vmul.f32 (%p1249_p8), -1.442695, %v3509_v7  ;;  %v2796_v39 = vmul.f32 (%p1249_p8), -1.442695, %v3473_v63 }
 0x480   : >> { %v2095_v9 = vpop.xlane.xlu0 %2094  ;;  %v2098_v54 = vpop.xlane.xlu1 %2097  ;;  %2978 = vmatprep.subr.bf16.mxu0 %v3283_v27  ;;  %v2801_v53 = vmul.f32 (%p1249_p8), -1.442695, %v3521_v17  ;;  %v2797_v56 = vmul.f32 (%p1249_p8), -1.442695, %v3481_v1 }
 0x481   : >> { %v2976_v47 = vpack.c.bf16 %v1876_v25, %v1875_v22  ;;  %v1990_v12 = vmul.f32 %v3175_v40, %v1876_v25  ;;  %v2103_v21 = vmul.f32 %v2791_v23, %v2095_v9  ;;  %v2105_v5 = vmul.f32 %v3177_v8, %v1991_v57  ;;  %v3181_v8 = vld [vmem:[%s4083_s10 + $0x8] sm:$0xff] (%p1249_p8)  }
 0x482   : >> { %2921 = vmatmul.mubr.msk.f32.vlgmr.msra.gmra.mrb[4].mxu0 %vm1195_vm9, %v2746_v60  ;;  %v2104_v15 = vmul.f32 %v2791_v23, %v2098_v54  ;;  %v2799_v40 = vmul.f32 (%p1249_p8), -1.442695, %v3477_v0  ;;  %3184 = vpow2.f32 (%p1249_p8), %v2800_v51  ;;  %v2798_v25 = vmul.f32 (%p1249_p8), -1.442695, %v3469_v62 }
 0x483   : >> { %v1992_v30 = vadd.f32 %v1990_v12, %v1988_v50  ;;  %2977 = vmatpush3.bf16.msra.mxu1 %v2976_v47  ;;  %2934 = vmatprep.mubr.msk.f32.mxu0 %vm3284_vm10, %v3285_v59  ;;  %v2107_v19 = vadd.f32 %v2105_v5, %v2103_v21   ;;  %3186 = vpow2.f32 (%p1249_p8), %v2796_v39 }
 0x484   : >> { %2981 = vmatprep.subr.bf16.mxu1 %v3283_v27  ;;  %3188 = vpow2.f32 (%p1249_p8), %v2801_v53 }
 0x485   : >> { %v2979_v42 = vpack.c.bf16 %v1992_v30, %v1991_v57  ;;  %v2106_v52 = vmul.f32 %v3179_v49, %v1992_v30  ;;  %v4094_v23 = vmov %v2107_v19  ;;  %2184 = vst.msk [vmem:[#allocation2] sm:$0xff] (%p1249_p8), %vm677_vm2, %v2107_v19  ;;  %v2803_v57 = vmul.f32 (%p1249_p8), -1.442695, %v3513_v11 }
 0x486   : >> { %2928 = vmatmul.mubr.msk.f32.vlgmr.msra.gmra.mrb[4].mxu1 %vm1195_vm9, %v2760_v18  ;;  %3190 = vpow2.f32 (%p1249_p8), %v2797_v56 }
 0x487   : >> { %v2108_v61 = vadd.f32 %v2106_v52, %v2104_v15   ;;  %2980 = vmatpush3.bf16.msra.mxu0 %v2979_v42  ;;  %2941 = vmatprep.mubr.msk.f32.mxu1 %vm3284_vm10, %v3285_v59  ;;  %3192 = vpow2.f32 (%p1249_p8), %v2799_v40  ;;  %v3182_v15 = vld [vmem:[%s4083_s10 + $0x10] sm:$0xff] (%p1249_p8)  }
 0x488   : > { %2944 = vmatprep.subr.bf16.mxu0 (%p1249_p8), %v3180_v38  ;;  %3194 = vpow2.f32 (%p1249_p8), %v2798_v25 }
 0x489   : >> { %v2982_v10 = vpack.c.bf16 %v2108_v61, %v2107_v19  ;;  %v4093_v42 = vmov %v2108_v61  ;;  %2185 = vst.msk [vmem:[#allocation2 + $0x8] sm:$0xff] (%p1249_p8), %vm677_vm2, %v2108_v61  ;;  %3196 = vpow2.f32 (%p1249_p8), %v2803_v57  ;;  %v3183_v19 = vld [vmem:[%s4083_s10 + $0x18] sm:$0xff] (%p1249_p8)  }
 0x48a   : >> { %2935 = vmatmul.mubr.msk.f32.vlgmr.msra.gmra.mrb[6].mxu0 %vm1195_vm9, %v2774_v13  ;;  %3198 = vpow2.f32 (%p1249_p8), %v2802_v58 }
 0x48b   : >> { %2983 = vmatpush3.bf16.msra.mxu1 %v2982_v10  ;;  %2945 = vmatpush3.bf16.msra.mxu0 (%p1249_p8), %v3180_v38 }
 0x48c   : > { %2984 = vmatprep.subr.bf16.mxu1 (%p1249_p8), %v3180_v38  ;;  %v3185_v14 = vpop.eup (%p1249_p8), %3184  ;;  %2946 = vmatprep.subr.bf16.mxu0 (%p1249_p8), %v3181_v8 }
 0x48d   : > { %v3187_v55 = vpop.eup (%p1249_p8), %3186  ;;  %v2245_v50 = vadd.f32 (%p1249_p8), 1.0, %v3185_v14 }
 0x48e   : >> { %2942 = vmatmul.mubr.msk.f32.vlgmr.msra.gmra.mrb[6].mxu1 %vm1195_vm9, %v2788_v46  ;;  %v3189_v23 = vpop.eup (%p1249_p8), %3188  ;;  %v2241_v60 = vadd.f32 (%p1249_p8), 1.0, %v3187_v55 }
 0x48f   : > { %2988 = vmatpush3.bf16.msra.mxu1 (%p1249_p8), %v3180_v38  ;;  %3200 = vrcp.f32 (%p1249_p8), %v2245_v50  ;;  %v2246_v54 = vadd.f32 (%p1249_p8), 1.0, %v3189_v23  ;;  %2947 = vmatpush3.bf16.msra.mxu0 (%p1249_p8), %v3181_v8 }
 0x490   : > { %v3191_v9 = vpop.eup (%p1249_p8), %3190  ;;  %3202 = vrcp.f32 (%p1249_p8), %v2241_v60  ;;  %2985 = vmatprep.subr.bf16.mxu1 (%p1249_p8), %v3181_v8  ;;  %2948 = vmatprep.subr.bf16.mxu0 (%p1249_p8), %v3182_v15 }
 0x491   : > { %v3193_v47 = vpop.eup (%p1249_p8), %3192  ;;  %v2242_v12 = vadd.f32 (%p1249_p8), 1.0, %v3191_v9  ;;  %3204 = vrcp.f32 (%p1249_p8), %v2246_v54 }
 0x492   : > { %v3195_v49 = vpop.eup (%p1249_p8), %3194  ;;  %v2244_v21 = vadd.f32 (%p1249_p8), 1.0, %v3193_v47 }
 0x493   : > { %2989 = vmatpush3.bf16.msra.mxu1 (%p1249_p8), %v3181_v8  ;;  %v3197_v30 = vpop.eup (%p1249_p8), %3196  ;;  %3206 = vrcp.f32 (%p1249_p8), %v2242_v12  ;;  %v2243_v5 = vadd.f32 (%p1249_p8), 1.0, %v3195_v49  ;;  %2949 = vmatpush3.bf16.msra.mxu0 (%p1249_p8), %v3182_v15 }
 0x494   : > { %v3199_v18 = vpop.eup (%p1249_p8), %3198  ;;  %3208 = vrcp.f32 (%p1249_p8), %v2244_v21  ;;  %v2248_v42 = vadd.f32 (%p1249_p8), 1.0, %v3197_v30  ;;  %2986 = vmatprep.subr.bf16.mxu1 (%p1249_p8), %v3182_v15  ;;  %2950 = vmatprep.subr.bf16.mxu0 (%p1249_p8), %v3183_v19 }
 0x495   : > { %3210 = vrcp.f32 (%p1249_p8), %v2243_v5  ;;  %v2247_v52 = vadd.f32 (%p1249_p8), 1.0, %v3199_v18 }
 0x496   : > { %3212 = vrcp.f32 (%p1249_p8), %v2248_v42 }
 0x497   : > { %2990 = vmatpush3.bf16.msra.mxu1 (%p1249_p8), %v3182_v15  ;;  %3214 = vrcp.f32 (%p1249_p8), %v2247_v52  ;;  %2951 = vmatpush3.bf16.msra.mxu0 (%p1249_p8), %v3183_v19 }
 0x498   : > { %2987 = vmatprep.subr.bf16.mxu1 (%p1249_p8), %v3183_v19 }
 0x499   : > { %v3201_v61 = vpop.eup (%p1249_p8), %3200 }
 0x49a   : > { %v3203_v13 = vpop.eup (%p1249_p8), %3202  ;;  %v2269_v10 = vmul.f32 (%p1249_p8), %v3201_v61, %v3509_v7 }
 0x49b   : > { %2991 = vmatpush3.bf16.msra.mxu1 (%p1249_p8), %v3183_v19  ;;  %v3205_v46 = vpop.eup (%p1249_p8), %3204 }
 0x49c   : > { %2289 = vrot.lane.b32.xlu1 (%p1249_p8), %v2269_v10, %s3282_s18 }
 0x545   : >> { %v1365_v27 = vpop.f32.mrb[0].mxu0 }
 0x546   : >> { %1371 = vst.msk [vmem:[%s1369_s16] sm:$0x1] %vm1370_vm11, %v1365_v27  ;;  %v2894_v2 = vpop.f32.mrb[1].mxu0  ;;  %v2265_v27 = vmul.f32 (%p1249_p8), %v3203_v13, %v3473_v63 }
 0x547   : > { %v3207_v2 = vpop.eup (%p1249_p8), %3206 }
 0x548   : > { %2281 = vrot.lane.b32.xlu0 (%p1249_p8), %v2265_v27, %s3282_s18 }
 0x549   : >> { %v1482_v26 = vpop.f32.mrb[0].mxu1 }
 0x54a   : >> { %2710 = vst.msk [vmem:[%s1369_s16 + $0x1] sm:$0x1] %vm1370_vm11, %v1482_v26  ;;  %v2901_v33 = vpop.f32.mrb[1].mxu1  ;;  %v2270_v26 = vmul.f32 (%p1249_p8), %v3205_v46, %v3521_v17 }
 0x54b   : > { %v3209_v33 = vpop.eup (%p1249_p8), %3208 }
 0x54c   : > { %2291 = vrot.lane.b32.xlu1 (%p1249_p8), %v2270_v26, %s3282_s18 }
 0x54d   : >> { %v1598_v35 = vpop.f32.mrb[2].mxu0 }
 0x54e   : >> { %2724 = vst.msk [vmem:[%s1369_s16 + $0x2] sm:$0x1] %vm1370_vm11, %v1598_v35  ;;  %v2908_v59 = vpop.f32.mrb[3].mxu0  ;;  %v2266_v35 = vmul.f32 (%p1249_p8), %v3207_v2, %v3481_v1 }
 0x54f   : > { %v3211_v59 = vpop.eup (%p1249_p8), %3210 }
 0x550   : > { %2283 = vrot.lane.b32.xlu0 (%p1249_p8), %v2266_v35, %s3282_s18  ;;  %v2267_v63 = vmul.f32 (%p1249_p8), %v3211_v59, %v3469_v62 }
 0x551   : >> { %v1714_v36 = vpop.f32.mrb[2].mxu1 }
 0x552   : >> { %2738 = vst.msk [vmem:[%s1369_s16 + $0x3] sm:$0x1] %vm1370_vm11, %v1714_v36  ;;  %v2915_v6 = vpop.f32.mrb[3].mxu1  ;;  %v2268_v36 = vmul.f32 (%p1249_p8), %v3209_v33, %v3477_v0  ;;  %v2795_v0 = vld [vmem:[%s4082_s9] ss:$0 sm:$0xff] (%p1249_p8) }
 0x553   : > { %v3213_v6 = vpop.eup (%p1249_p8), %3212  ;;  %v2205_v1 = vmul.f32 (%p1249_p8), %v2795_v0, %v3598_v41  ;;  %v2206_v62 = vmul.f32 (%p1249_p8), %v2795_v0, %v3600_v29  ;;  %v2204_v39 = vmul.f32 (%p1249_p8), %v2795_v0, %v3592_v37  ;;  %v2203_v41 = vmul.f32 (%p1249_p8), %v2795_v0, %v3587_v34 }
 0x554   : > { %v3215_v7 = vpop.eup (%p1249_p8), %3214  ;;  %2287 = vrot.lane.b32.xlu1 (%p1249_p8), %v2268_v36, %s3282_s18  ;;  %v2272_v17 = vmul.f32 (%p1249_p8), %v3213_v6, %v3513_v11  ;;  %2285 = vrot.lane.b32.xlu0 (%p1249_p8), %v2267_v63, %s3282_s18  ;;  %v2207_v60 = vmul.f32 (%p1249_p8), %v2795_v0, %v3605_v43 }
 0x555   : >> { %v1830_v28 = vpop.f32.mrb[4].mxu0 }
 0x556   : >> { %2752 = vst.msk [vmem:[%s1369_s16 + $0x4] sm:$0x1] %vm1370_vm11, %v1830_v28  ;;  %v2922_v20 = vpop.f32.mrb[5].mxu0  ;;  %v2271_v28 = vmul.f32 (%p1249_p8), %v3215_v7, %v3495_v4 }
 0x558   : > { %2295 = vrot.lane.b32.xlu1 (%p1249_p8), %v2272_v17, %s3282_s18  ;;  %2293 = vrot.lane.b32.xlu0 (%p1249_p8), %v2271_v28, %s3282_s18 }
 0x559   : >> { %v1946_v16 = vpop.f32.mrb[4].mxu1 }
 0x55a   : >> { %2766 = vst.msk [vmem:[%s1369_s16 + $0x5] sm:$0x1] %vm1370_vm11, %v1946_v16  ;;  %v2929_v22 = vpop.f32.mrb[5].mxu1  ;;  %v2201_v16 = vmul.f32 (%p1249_p8), %v2795_v0, %v3581_v31 }
 0x55b   : > { %v2202_v22 = vmul.f32 (%p1249_p8), %v2795_v0, %v3584_v32  ;;  %v2208_v32 = vmul.f32 (%p1249_p8), %v2795_v0, %v3607_v44 }
 0x55c   : > { %1251 = sbr.rel (!%p1249_p8) target bundleno = 978 (0x3d2), region = 145 }
 0x55d   : >> { %v2062_v3 = vpop.f32.mrb[6].mxu0 }
 0x55e   : >> { %2780 = vst.msk [vmem:[%s1369_s16 + $0x6] sm:$0x1] %vm1370_vm11, %v2062_v3  ;;  %v2936_v45 = vpop.f32.mrb[7].mxu0 }
 0x55f   : > { %v2290_v45 = vpop.permute.xlu1 (%p1249_p8), %2289 }
 0x561   : >> { %v2178_v48 = vpop.f32.mrb[6].mxu1 }
 0x562   : >> { %2794 = vst.msk [vmem:[%s1369_s16 + $0x7] sm:$0x1] %vm1370_vm11, %v2178_v48  ;;  %v2943_v24 = vpop.f32.mrb[7].mxu1 }
 0x569   : > { %v2190_v20 = vld [vmem:[#allocation9 + $0x20] sm:$0xff]  ;;  %v2191_v11 = vld [vmem:[#allocation9 + $0x28] sm:$0xff]  ;;  %v2189_v40 = vld [vmem:[#allocation9 + $0x18] sm:$0xff] }
 0x56a   : > { %v2186_v3 = vld [vmem:[#allocation9] sm:$0xff]  ;;  %v2187_v4 = vld [vmem:[#allocation9 + $0x8] sm:$0xff]  ;;  %v2213_v48 = vadd.f32 %v2205_v1, %v2190_v20  ;;  %v2214_v51 = vadd.f32 %v2206_v62, %v2191_v11  ;;  %v2188_v29 = vld [vmem:[#allocation9 + $0x10] sm:$0xff]  ;;  %v2212_v58 = vadd.f32 %v2204_v39, %v2189_v40 }
 0x56b   : > { %v2209_v53 = vadd.f32 %v2201_v16, %v2186_v3  ;;  %v2210_v56 = vadd.f32 %v2202_v22, %v2187_v4  ;;  %v2211_v50 = vadd.f32 %v2203_v41, %v2188_v29  ;;  %v2193_v23 = vld [vmem:[#allocation9 + $0x38] sm:$0xff]  ;;  %v2192_v8 = vld [vmem:[#allocation9 + $0x30] sm:$0xff] }
 0x56c   : > { %v2309_v57 = vmul.f32 %v2290_v45, %v2213_v48  ;;  %v2216_v12 = vadd.f32 %v2208_v32, %v2193_v23  ;;  %v2215_v44 = vadd.f32 %v2207_v60, %v2192_v8 }
 0x5ba   : > { %v2282_v24 = vpop.permute.xlu0 %2281 }
 0x5bb   : > { %v2305_v14 = vmul.f32 %v2282_v24, %v2209_v53 }
 0x5be   : > { %v2292_v25 = vpop.permute.xlu1 %2291 }
 0x5bf   : > { %v2310_v31 = vmul.f32 %v2292_v25, %v2214_v51 }
 0x5c1   : > { %v2315_v37 = vpack.c.bf16 %v2310_v31, %v2309_v57 }
 0x5c2   : > { %v2284_v38 = vpop.permute.xlu0 %2283 }
 0x5c3   : > { %v2306_v55 = vmul.f32 %v2284_v38, %v2210_v56  ;;  %2956 = vmatprep.mubr.msk.bf16.mxu1 %vm677_vm2, %v2315_v37 }
 0x5c5   : > { %v2313_v54 = vpack.c.bf16 %v2306_v55, %v2305_v14 }
 0x5c6   : > { %v2288_v9 = vpop.permute.xlu1 %2287  ;;  %v2286_v34 = vpop.permute.xlu0 %2285 }
 0x5c7   : > { %v2308_v47 = vmul.f32 %v2288_v9, %v2212_v58  ;;  %v2307_v49 = vmul.f32 %v2286_v34, %v2211_v50  ;;  %2952 = vmatprep.mubr.msk.bf16.mxu0 %vm677_vm2, %v2313_v54 }
 0x5c9   : > { %v2314_v21 = vpack.c.bf16 %v2308_v47, %v2307_v49 }
 0x5ca   : > { %v2296_v30 = vpop.permute.xlu1 %2295  ;;  %v2294_v5 = vpop.permute.xlu0 %2293 }
 0x5cb   : > { %v2312_v43 = vmul.f32 %v2296_v30, %v2216_v12  ;;  %v2311_v15 = vmul.f32 %v2294_v5, %v2215_v44  ;;  %2953 = vmatmul.mubr.msk.bf16.vlgmr.msra.gmra.mrb[0].mxu0 %vm677_vm2, %v2314_v21 }
 0x5cd   : > { %v2316_v18 = vpack.c.bf16 %v2312_v43, %v2311_v15 }
 0x5cf   : > { %2957 = vmatmul.mubr.msk.bf16.vlgmr.msra.gmra.mrb[0].mxu1 %vm677_vm2, %v2316_v18 }
 0x69e   : > { %v2954_v42 = vpop.f32.mrb[0].mxu0 }
 0x69f   : > { %2428 = vst.msk [vmem:[%s3382_s14 + $0x10] sm:$0xff] %vm443_vm1, %v2954_v42  ;;  %v2395_v52 = vpop.f32.mrb[1].mxu0 }
 0x6a0   : > { %2426 = vst.msk [vmem:[%s3382_s14] sm:$0xff] %vm443_vm1, %v2395_v52  ;;  %v2955_v19 = vpop.f32.mrb[2].mxu0 }
 0x6a1   : > { %2429 = vst.msk [vmem:[%s3382_s14 + $0x18] sm:$0xff] %vm443_vm1, %v2955_v19  ;;  %v2398_v61 = vpop.f32.mrb[3].mxu0 }
 0x6a2   : > { %2427 = vst.msk [vmem:[%s3382_s14 + $0x8] sm:$0xff] %vm443_vm1, %v2398_v61  ;;  %v2958_v13 = vpop.f32.mrb[0].mxu1 }
 0x6a3   : > { %2432 = vst.msk [vmem:[%s3382_s14 + $0x30] sm:$0xff] %vm443_vm1, %v2958_v13  ;;  %v2411_v10 = vpop.f32.mrb[1].mxu1 }
 0x6a4   : > { %2430 = vst.msk [vmem:[%s3382_s14 + $0x20] sm:$0xff] %vm443_vm1, %v2411_v10  ;;  %v2959_v46 = vpop.f32.mrb[2].mxu1 }
 0x6a5   : > { %2433 = vst.msk [vmem:[%s3382_s14 + $0x38] sm:$0xff] %vm443_vm1, %v2959_v46  ;;  %v2414_v27 = vpop.f32.mrb[3].mxu1 }
 0x6a6   : > { %2431 = vst.msk [vmem:[%s3382_s14 + $0x28] sm:$0xff] %vm443_vm1, %v2414_v27 }
 0x6a7 PF: > { %s21_s21 = sadd.s32 1, %s3266_s21   ;;  %s4095_s17 = smov %s3258_s19 }
 0x6a8   : > { %p18_p9 = scmp.ge.s32.totalorder %s21_s21, 10   ;;  %s4096_s18 = smov %s3262_s20 }
 0x6a9   : > { %s4097_s19 = smov %s4100_s22  ;;  %s4098_s20 = smov %s4104_s23 }
 0x6aa   :  { %20 = sbr.rel (!%p18_p9) target bundleno = 3 (0x3), region = 156 }

</bundles_post_ra>
